<compile_context>
chip_gen: v6e
topology: v6e:2x2x1
jax: 0.10.0
libtpu: 0.0.40
codegen_flags: <defaults>
</compile_context>

<pallas_src>
import functools
import math

import jax
import jax.numpy as jnp
from jax.experimental import pallas as pl
from jax.experimental.pallas import tpu as pltpu

EPS = 1e-10  # LayerNormalization epsilon from the PyTorch module

_WEIGHT_ORDER = ("wq", "wk", "wv", "bq", "bk", "bv", "wo", "bo",
                 "g1", "be1", "w1", "bf1", "w2", "bf2", "g2", "be2")
_MATMUL_WEIGHTS = ("wq", "wk", "wv", "wo", "w1", "w2")


def _layer_norm(h, gamma, beta):
    # PyTorch module semantics: (x - mu) / (std_biased + eps) * gamma + beta
    mu = jnp.mean(h, axis=-1, keepdims=True)
    var = jnp.mean(jnp.square(h - mu), axis=-1, keepdims=True)
    return (h - mu) / (jnp.sqrt(var) + EPS) * gamma + beta


def encoder_block_kernel(
    x_ref,                     # (1, K, M)  f32   full sequence of this batch elem
    wq_ref, wk_ref, wv_ref,    # (M, M)     cdt   heads fused along the out dim
    bq_ref, bk_ref, bv_ref,    # (1, M)     f32
    wo_ref, bo_ref,            # (M, M) cdt / (1, M) f32
    g1_ref, be1_ref,           # (1, M)     f32
    w1_ref, bf1_ref,           # (M, F) cdt / (1, F) f32
    w2_ref, bf2_ref,           # (F, M) cdt / (1, M) f32
    g2_ref, be2_ref,           # (1, M)     f32
    o_ref,                     # (1, TQ, M) f32
    k_cache, v_cache,          # (H, K, dh) cdt scratch: K/V cached across q tiles
    cat_ref,                   # (TQ, M)    cdt scratch: head-concat buffer
    *, num_heads, q_tile,
):
    M = x_ref.shape[2]
    dh = M // num_heads
    cdt = wq_ref.dtype                 # MXU input dtype (bf16 or f32)
    scale = dh ** -0.5                 # reference scales scores by 1/sqrt(dim_q)=1/sqrt(dh)

    qi = pl.program_id(1)

    # ---- K/V projections: computed once per batch element (first q tile only),
    #      bias folded, stored head-major in compute dtype (one-time relayout). ----
    @pl.when(qi == 0)
    def _():
        x_kv = x_ref[0].astype(cdt)                                   # cast once
        k_full = jnp.dot(x_kv, wk_ref[...],
                         preferred_element_type=jnp.float32) + bk_ref[...]
        v_full = jnp.dot(x_kv, wv_ref[...],
                         preferred_element_type=jnp.float32) + bv_ref[...]
        for h in range(num_heads):
            lo = h * dh
            k_cache[h] = k_full[:, lo:lo + dh].astype(cdt)
            v_cache[h] = v_full[:, lo:lo + dh].astype(cdt)

    # ---- Q projection for this tile; 1/sqrt(dh) folded into q once. ----
    q0 = pl.multiple_of(qi * q_tile, q_tile)
    x_q = x_ref[0, pl.ds(q0, q_tile), :]                              # (TQ, M) f32
    q = jnp.dot(x_q.astype(cdt), wq_ref[...],
                preferred_element_type=jnp.float32) + bq_ref[...]
    q = (q * scale).astype(cdt)                                       # cast once

    # ---- per-head attention; concat built in scratch, one wide W_o matmul. ----
    # TODO(synk): flash-style online softmax over KV tiles once K >~ 2048.
    for h in range(num_heads):                 # static unroll, num_heads is small
        lo = h * dh
        s = jax.lax.dot_general(               # (TQ, K) = q_h @ k_h^T
            q[:, lo:lo + dh], k_cache[h],
            (((1,), (1,)), ((), ())), preferred_element_type=jnp.float32)
        p = jnp.exp(s - jnp.max(s, axis=-1, keepdims=True))
        denom = jnp.sum(p, axis=-1, keepdims=True)
        head = jnp.dot(p.astype(cdt), v_cache[h],
                       preferred_element_type=jnp.float32)            # (TQ, dh)
        cat_ref[:, lo:lo + dh] = (head / denom).astype(cdt)           # normalize after PV

    attn = jnp.dot(cat_ref[...], wo_ref[...],
                   preferred_element_type=jnp.float32) + bo_ref[...]  # (TQ, M)

    # ---- residual + LayerNorm 1 (dropout is identity at inference). ----
    out2 = _layer_norm(x_q + attn, g1_ref[...], be1_ref[...])

    # ---- FeedForward: linear - relu - linear. ----
    # TODO(synk): tile F with a reduction grid axis at transformer scale.
    hid = jnp.dot(out2.astype(cdt), w1_ref[...],
                  preferred_element_type=jnp.float32) + bf1_ref[...]
    hid = jnp.maximum(hid, 0.0)
    ff = jnp.dot(hid.astype(cdt), w2_ref[...],
                 preferred_element_type=jnp.float32) + bf2_ref[...]

    # ---- residual + LayerNorm 2. ----
    o_ref[0] = _layer_norm(out2 + ff, g2_ref[...], be2_ref[...]).astype(o_ref.dtype)


def encoder_block(x, params, num_heads, *, q_tile=None, single_buffer_weights=False):
    N, K, M = x.shape
    assert M % num_heads == 0, (M, num_heads)
    dh = M // num_heads
    cdt = params["wq"].dtype

    if q_tile is None:
        # 256-row q tiles fill the 256x256 MXU on v6e/v7x; fall back for short K.
        if K <= 256:
            q_tile = K
        elif K % 256 == 0:
            q_tile = 256
        elif K % 128 == 0:
            q_tile = 128
        else:
            q_tile = K
    # TODO(synk): ragged sequence lengths (masking) not supported.
    assert K % q_tile == 0 and (q_tile == K or q_tile % 8 == 0), (K, q_tile)
    num_q_tiles = K // q_tile

    def full_spec(shape):
        # Grid-invariant weight block (constant index_map -> DMA'd once).
        if single_buffer_weights:
            # v7x VMEM-fit knob: don't hold a useless second copy of every weight.
            return pl.BlockSpec(shape, lambda n, qi: (0,) * len(shape),
                                pipeline_mode=pl.Buffered(1))
        return pl.BlockSpec(shape, lambda n, qi: (0,) * len(shape))

    in_specs = [pl.BlockSpec((1, K, M), lambda n, qi: (n, 0, 0))]
    args = [x]
    for name in _WEIGHT_ORDER:
        w = params[name]
        in_specs.append(full_spec(w.shape))
        args.append(w)

    # VMEM budget: double-buffered x/out blocks, weights (double-buffered unless
    # single_buffer_weights), plus K/V + concat scratch; capped generation-aware
    # (~3/4 of physical VMEM: ~96 MiB on v5e/v6e, ~48 MiB on v7x).
    weight_bytes = sum(int(params[n].size) * jnp.dtype(params[n].dtype).itemsize
                       for n in _WEIGHT_ORDER)
    cdt_bytes = jnp.dtype(cdt).itemsize
    est = (2 * (K * M + q_tile * M) * x.dtype.itemsize
           + (1 if single_buffer_weights else 2) * weight_bytes
           + (2 * K * M + q_tile * M) * cdt_bytes)
    est += est // 2            # activation temporaries / compiler scratch headroom
    try:
        phys_vmem = pltpu.get_tpu_info().vmem_capacity_bytes
    except Exception:          # non-TPU / interpret fallback
        phys_vmem = 64 * 2 ** 20
    vmem_limit = int(min(phys_vmem * 3 // 4, max(32 * 2 ** 20, est)))

    kernel = functools.partial(encoder_block_kernel,
                               num_heads=num_heads, q_tile=q_tile)
    return pl.pallas_call(
        kernel,
        out_shape=jax.ShapeDtypeStruct((N, K, M), x.dtype),
        grid=(N, num_q_tiles),
        in_specs=in_specs,
        out_specs=pl.BlockSpec((1, q_tile, M), lambda n, qi: (n, qi, 0)),
        scratch_shapes=[
            pltpu.VMEM((num_heads, K, dh), cdt),   # K cache (head-major, bias folded)
            pltpu.VMEM((num_heads, K, dh), cdt),   # V cache
            pltpu.VMEM((q_tile, M), cdt),          # head-concat buffer
        ],
        compiler_params=pltpu.CompilerParams(
            # Axis 1 carries the K/V cache -> must stay sequential ("arbitrary").
            # Axis 0 (batch) stays "parallel" for v7x megacore sharding.
            # TODO(synk): if N == 1, split axis 1 into an outer parallel pair.
            dimension_semantics=("parallel", "arbitrary"),
            vmem_limit_bytes=vmem_limit),
    )(*args)


def init_params(key, num_heads, emb_dim, feedforward_dim):
    """f32 parameters matching the PyTorch module's init distributions; weight
    matrices stored (in_dim, out_dim), Q/K/V fused across heads along the output
    dim, W_o rows head-major (matches torch.cat(heads) @ linear.weight.T)."""
    M, F, H = emb_dim, feedforward_dim, num_heads
    dh = M // H
    keys = jax.random.split(key, 12)
    u = lambda k, shape, c: jax.random.uniform(k, shape, jnp.float32, -c, c)
    c_qk = math.sqrt(6.0 / (M + dh))      # per-head Linear(M, dh) init
    c_o = math.sqrt(6.0 / (M + dh * H))   # Linear(dh*H, M) init
    c_ff = math.sqrt(6.0 / (M + F))       # both FFN linears use this bound
    b_m = 1.0 / math.sqrt(M)              # nn.Linear default bias bound
    b_f = 1.0 / math.sqrt(F)
    return {
        "wq": u(keys[0], (M, M), c_qk), "wk": u(keys[1], (M, M), c_qk),
        "wv": u(keys[2], (M, M), c_qk),
        "bq": u(keys[3], (1, M), b_m), "bk": u(keys[4], (1, M), b_m),
        "bv": u(keys[5], (1, M), b_m),
        "wo": u(keys[6], (M, M), c_o), "bo": u(keys[7], (1, M), b_m),
        "g1": jnp.ones((1, M), jnp.float32), "be1": jnp.zeros((1, M), jnp.float32),
        "w1": u(keys[8], (M, F), c_ff), "bf1": u(keys[9], (1, F), b_m),
        "w2": u(keys[10], (F, M), c_ff), "bf2": u(keys[11], (1, M), b_f),
        "g2": jnp.ones((1, M), jnp.float32), "be2": jnp.zeros((1, M), jnp.float32),
    }


def cast_matmul_params(params, dtype):
    """Cast the big matmul matrices (MXU inputs) to `dtype`; biases/gamma/beta stay f32.
    TODO(synk): on v7x this hook can also store weights in fp8 (2x MXU rate)."""
    return {k: (v.astype(dtype) if k in _MATMUL_WEIGHTS else v)
            for k, v in params.items()}


def encoder_block_torch_ref(x, p, num_heads):
    """Plain-JAX transcription of the PyTorch forward, op-for-op (f32 params)."""
    _, _, M = x.shape
    dh = M // num_heads
    q = x @ p["wq"] + p["bq"][0]
    k = x @ p["wk"] + p["bk"][0]
    v = x @ p["wv"] + p["bv"][0]
    heads = []
    for h in range(num_heads):
        sl = slice(h * dh, (h + 1) * dh)
        qk = jnp.einsum("nqd,nkd->nqk", q[..., sl], k[..., sl])
        w = jax.nn.softmax(qk / jnp.sqrt(jnp.float32(dh)), axis=-1)
        heads.append(jnp.einsum("nqk,nkd->nqd", w, v[..., sl]))
    attn = jnp.concatenate(heads, axis=-1) @ p["wo"] + p["bo"][0]
    out2 = _layer_norm(x + attn, p["g1"][0], p["be1"][0])
    ff = jnp.maximum(out2 @ p["w1"] + p["bf1"][0], 0.0) @ p["w2"] + p["bf2"][0]
    return _layer_norm(out2 + ff, p["g2"][0], p["be2"][0])


def encoder_block_mirror_ref(x, p, num_heads):
    """Plain-JAX mirror of the kernel's exact math (same casts and op order)."""
    _, _, M = x.shape
    dh = M // num_heads
    cdt = p["wq"].dtype
    scale = dh ** -0.5
    mm = lambda a, w: jnp.dot(a.astype(cdt), w, preferred_element_type=jnp.float32)
    q = ((mm(x, p["wq"]) + p["bq"][0]) * scale).astype(cdt)
    k = mm(x, p["wk"]) + p["bk"][0]
    v = mm(x, p["wv"]) + p["bv"][0]
    heads = []
    for h in range(num_heads):
        sl = slice(h * dh, (h + 1) * dh)
        k_h = k[..., sl].astype(cdt)
        v_h = v[..., sl].astype(cdt)
        s = jnp.einsum("nqd,nkd->nqk", q[..., sl], k_h,
                       preferred_element_type=jnp.float32)
        pm = jnp.exp(s - jnp.max(s, axis=-1, keepdims=True))
        denom = jnp.sum(pm, axis=-1, keepdims=True)
        head = jnp.einsum("nqk,nkd->nqd", pm.astype(cdt), v_h,
                          preferred_element_type=jnp.float32) / denom
        heads.append(head.astype(cdt))
    attn = jnp.dot(jnp.concatenate(heads, axis=-1), p["wo"],
                   preferred_element_type=jnp.float32) + p["bo"][0]
    out2 = _layer_norm(x + attn, p["g1"][0], p["be1"][0])
    hid = jnp.maximum(mm(out2, p["w1"]) + p["bf1"][0], 0.0)
    ff = mm(hid, p["w2"]) + p["bf2"][0]
    return _layer_norm(out2 + ff, p["g2"][0], p["be2"][0])


if __name__ == "__main__":
    N, K, M = 2, 8, 32
    num_heads, ff_dim = 4, 64

    key = jax.random.PRNGKey(0)
    kx, kp = jax.random.split(key)
    x = jax.random.normal(kx, (N, K, M), jnp.float32)
    p32 = init_params(kp, num_heads, M, ff_dim)
    pbf = cast_matmul_params(p32, jnp.bfloat16)

    out32 = jax.block_until_ready(encoder_block(x, p32, num_heads))
    outbf = jax.block_until_ready(encoder_block(x, pbf, num_heads))
    assert out32.shape == (N, K, M) and outbf.shape == (N, K, M)
    assert bool(jnp.all(jnp.isfinite(out32))) and bool(jnp.all(jnp.isfinite(outbf)))

    # References. Backend-default-precision copy plus full-f32-precision copies
    # (so comparisons are robust to the TPU's default f32 matmul truncation).
    ref_torch_def = encoder_block_torch_ref(x, p32, num_heads)
    with jax.default_matmul_precision("highest"):
        ref_torch_hi = encoder_block_torch_ref(x, p32, num_heads)
        ref_mirror_32 = encoder_block_mirror_ref(x, p32, num_heads)
        ref_mirror_bf = encoder_block_mirror_ref(x, pbf, num_heads)

    # 1) The kernel's op re-ordering (scale folded into q, softmax denominator
    #    after PV, fused head concat) is semantics-preserving vs. PyTorch math.
    err_order = float(jnp.max(jnp.abs(ref_mirror_32 - ref_torch_hi)))
    assert err_order < 1e-4, f"re-ordering check failed: max err {err_order}"

    # 2) The Pallas kernel matches its plain-JAX mirror at identical mixed precision.
    err_bf = float(jnp.max(jnp.abs(outbf - ref_mirror_bf)))
    assert err_bf < 5e-3, f"bf16 kernel-vs-mirror check failed: max err {err_bf}"

    # 3) End-to-end f32 kernel vs PyTorch-ordering reference (coarse; the kernel's
    #    f32 matmul precision depends on the backend, so accept matching either
    #    the default- or highest-precision reference).
    err_32 = min(float(jnp.max(jnp.abs(out32 - ref_torch_hi))),
                 float(jnp.max(jnp.abs(out32 - ref_torch_def))))
    assert err_32 < 3e-2, f"f32 end-to-end check failed: max err {err_32}"

    print("KERNEL_OK")
</pallas_src>

<mosaic_0001>
module attributes {stable_mosaic.version = 11 : i64} {
  func.func @encoder_block_kernel(%arg0: i32, %arg1: i32, %arg2: memref<1x8x32xf32, #tpu.memory_space<vmem>>, %arg3: memref<32x32xf32, #tpu.memory_space<vmem>>, %arg4: memref<32x32xf32, #tpu.memory_space<vmem>>, %arg5: memref<32x32xf32, #tpu.memory_space<vmem>>, %arg6: memref<1x32xf32, #tpu.memory_space<vmem>>, %arg7: memref<1x32xf32, #tpu.memory_space<vmem>>, %arg8: memref<1x32xf32, #tpu.memory_space<vmem>>, %arg9: memref<32x32xf32, #tpu.memory_space<vmem>>, %arg10: memref<1x32xf32, #tpu.memory_space<vmem>>, %arg11: memref<1x32xf32, #tpu.memory_space<vmem>>, %arg12: memref<1x32xf32, #tpu.memory_space<vmem>>, %arg13: memref<32x64xf32, #tpu.memory_space<vmem>>, %arg14: memref<1x64xf32, #tpu.memory_space<vmem>>, %arg15: memref<64x32xf32, #tpu.memory_space<vmem>>, %arg16: memref<1x32xf32, #tpu.memory_space<vmem>>, %arg17: memref<1x32xf32, #tpu.memory_space<vmem>>, %arg18: memref<1x32xf32, #tpu.memory_space<vmem>>, %arg19: memref<1x8x32xf32, #tpu.memory_space<vmem>>, %arg20: memref<4x8x8xf32, #tpu.memory_space<vmem>>, %arg21: memref<4x8x8xf32, #tpu.memory_space<vmem>>, %arg22: memref<8x32xf32, #tpu.memory_space<vmem>>) attributes {dimension_semantics = [#tpu.dimension_semantics<parallel>, #tpu.dimension_semantics<arbitrary>], iteration_bounds = array<i64: 2, 1>, scalar_prefetch = 0 : i64, scratch_operands = 3 : i64, tpu.core_type = #tpu.core_type<tc>, window_params = [{transform_indices = @transform_0, window_bounds = array<i64: 1, 8, 32>}, {pipeline_mode = #tpu.pipeline_mode<synchronous>, transform_indices = @transform_1, window_bounds = array<i64: 32, 32>}, {pipeline_mode = #tpu.pipeline_mode<synchronous>, transform_indices = @transform_2, window_bounds = array<i64: 32, 32>}, {pipeline_mode = #tpu.pipeline_mode<synchronous>, transform_indices = @transform_3, window_bounds = array<i64: 32, 32>}, {pipeline_mode = #tpu.pipeline_mode<synchronous>, transform_indices = @transform_4, window_bounds = array<i64: 1, 32>}, {pipeline_mode = #tpu.pipeline_mode<synchronous>, transform_indices = @transform_5, window_bounds = array<i64: 1, 32>}, {pipeline_mode = #tpu.pipeline_mode<synchronous>, transform_indices = @transform_6, window_bounds = array<i64: 1, 32>}, {pipeline_mode = #tpu.pipeline_mode<synchronous>, transform_indices = @transform_7, window_bounds = array<i64: 32, 32>}, {pipeline_mode = #tpu.pipeline_mode<synchronous>, transform_indices = @transform_8, window_bounds = array<i64: 1, 32>}, {pipeline_mode = #tpu.pipeline_mode<synchronous>, transform_indices = @transform_9, window_bounds = array<i64: 1, 32>}, {pipeline_mode = #tpu.pipeline_mode<synchronous>, transform_indices = @transform_10, window_bounds = array<i64: 1, 32>}, {pipeline_mode = #tpu.pipeline_mode<synchronous>, transform_indices = @transform_11, window_bounds = array<i64: 32, 64>}, {pipeline_mode = #tpu.pipeline_mode<synchronous>, transform_indices = @transform_12, window_bounds = array<i64: 1, 64>}, {pipeline_mode = #tpu.pipeline_mode<synchronous>, transform_indices = @transform_13, window_bounds = array<i64: 64, 32>}, {pipeline_mode = #tpu.pipeline_mode<synchronous>, transform_indices = @transform_14, window_bounds = array<i64: 1, 32>}, {pipeline_mode = #tpu.pipeline_mode<synchronous>, transform_indices = @transform_15, window_bounds = array<i64: 1, 32>}, {pipeline_mode = #tpu.pipeline_mode<synchronous>, transform_indices = @transform_16, window_bounds = array<i64: 1, 32>}, {transform_indices = @transform_17, window_bounds = array<i64: 1, 8, 32>}]} {
    %c0_i32 = arith.constant 0 : i32
    %0 = arith.cmpi eq, %arg1, %c0_i32 : i32
    %1 = arith.extui %0 : i1 to i32
    %c0_i32_0 = arith.constant 0 : i32
    %2 = arith.cmpi ne, %1, %c0_i32_0 : i32
    scf.if %2 {
      %c0_88 = arith.constant 0 : index
      %c0_89 = arith.constant 0 : index
      %c0_90 = arith.constant 0 : index
      %154 = vector.load %arg2[%c0_88, %c0_89, %c0_90] : memref<1x8x32xf32, #tpu.memory_space<vmem>>, vector<1x8x32xf32>
      %155 = vector.shape_cast %154 : vector<1x8x32xf32> to vector<8x32xf32>
      %c0_91 = arith.constant 0 : index
      %c0_92 = arith.constant 0 : index
      %156 = vector.load %arg4[%c0_91, %c0_92] : memref<32x32xf32, #tpu.memory_space<vmem>>, vector<32x32xf32>
      %cst_93 = arith.constant dense<0.000000e+00> : vector<8x32xf32>
      %157 = tpu.matmul %155, %156, %cst_93 {dimension_numbers = #tpu.dot_dimension_numbers<[1], [0], [0], [1], [0, 0, 1, 1], [], []>} : vector<8x32xf32>, vector<32x32xf32>, vector<8x32xf32> -> vector<8x32xf32>
      %c0_94 = arith.constant 0 : index
      %c0_95 = arith.constant 0 : index
      %158 = vector.load %arg7[%c0_94, %c0_95] : memref<1x32xf32, #tpu.memory_space<vmem>>, vector<1x32xf32>
      %159 = vector.broadcast %158 : vector<1x32xf32> to vector<8x32xf32>
      %160 = arith.addf %157, %159 : vector<8x32xf32>
      %c0_96 = arith.constant 0 : index
      %c0_97 = arith.constant 0 : index
      %161 = vector.load %arg5[%c0_96, %c0_97] : memref<32x32xf32, #tpu.memory_space<vmem>>, vector<32x32xf32>
      %cst_98 = arith.constant dense<0.000000e+00> : vector<8x32xf32>
      %162 = tpu.matmul %155, %161, %cst_98 {dimension_numbers = #tpu.dot_dimension_numbers<[1], [0], [0], [1], [0, 0, 1, 1], [], []>} : vector<8x32xf32>, vector<32x32xf32>, vector<8x32xf32> -> vector<8x32xf32>
      %c0_99 = arith.constant 0 : index
      %c0_100 = arith.constant 0 : index
      %163 = vector.load %arg8[%c0_99, %c0_100] : memref<1x32xf32, #tpu.memory_space<vmem>>, vector<1x32xf32>
      %164 = vector.broadcast %163 : vector<1x32xf32> to vector<8x32xf32>
      %165 = arith.addf %162, %164 : vector<8x32xf32>
      %166 = vector.extract_strided_slice %160 {offsets = [0, 0], sizes = [8, 8], strides = [1, 1]} : vector<8x32xf32> to vector<8x8xf32>
      %c0_101 = arith.constant 0 : index
      %c0_102 = arith.constant 0 : index
      %c0_103 = arith.constant 0 : index
      %167 = vector.load %arg20[%c0_101, %c0_102, %c0_103] : memref<4x8x8xf32, #tpu.memory_space<vmem>>, vector<1x8x8xf32>
      %168 = vector.shape_cast %167 : vector<1x8x8xf32> to vector<8x8xf32>
      %169 = vector.shape_cast %166 : vector<8x8xf32> to vector<1x8x8xf32>
      tpu.vector_store %arg20[%c0_101, %c0_102, %c0_103], %169 {strides = array<i32>} : memref<4x8x8xf32, #tpu.memory_space<vmem>>, vector<1x8x8xf32>,
      %170 = vector.extract_strided_slice %165 {offsets = [0, 0], sizes = [8, 8], strides = [1, 1]} : vector<8x32xf32> to vector<8x8xf32>
      %c0_104 = arith.constant 0 : index
      %c0_105 = arith.constant 0 : index
      %c0_106 = arith.constant 0 : index
      %171 = vector.load %arg21[%c0_104, %c0_105, %c0_106] : memref<4x8x8xf32, #tpu.memory_space<vmem>>, vector<1x8x8xf32>
      %172 = vector.shape_cast %171 : vector<1x8x8xf32> to vector<8x8xf32>
      %173 = vector.shape_cast %170 : vector<8x8xf32> to vector<1x8x8xf32>
      tpu.vector_store %arg21[%c0_104, %c0_105, %c0_106], %173 {strides = array<i32>} : memref<4x8x8xf32, #tpu.memory_space<vmem>>, vector<1x8x8xf32>,
      %174 = vector.extract_strided_slice %160 {offsets = [0, 8], sizes = [8, 8], strides = [1, 1]} : vector<8x32xf32> to vector<8x8xf32>
      %c1_107 = arith.constant 1 : index
      %c0_108 = arith.constant 0 : index
      %c0_109 = arith.constant 0 : index
      %175 = vector.load %arg20[%c1_107, %c0_108, %c0_109] : memref<4x8x8xf32, #tpu.memory_space<vmem>>, vector<1x8x8xf32>
      %176 = vector.shape_cast %175 : vector<1x8x8xf32> to vector<8x8xf32>
      %177 = vector.shape_cast %174 : vector<8x8xf32> to vector<1x8x8xf32>
      tpu.vector_store %arg20[%c1_107, %c0_108, %c0_109], %177 {strides = array<i32>} : memref<4x8x8xf32, #tpu.memory_space<vmem>>, vector<1x8x8xf32>,
      %178 = vector.extract_strided_slice %165 {offsets = [0, 8], sizes = [8, 8], strides = [1, 1]} : vector<8x32xf32> to vector<8x8xf32>
      %c1_110 = arith.constant 1 : index
      %c0_111 = arith.constant 0 : index
      %c0_112 = arith.constant 0 : index
      %179 = vector.load %arg21[%c1_110, %c0_111, %c0_112] : memref<4x8x8xf32, #tpu.memory_space<vmem>>, vector<1x8x8xf32>
      %180 = vector.shape_cast %179 : vector<1x8x8xf32> to vector<8x8xf32>
      %181 = vector.shape_cast %178 : vector<8x8xf32> to vector<1x8x8xf32>
      tpu.vector_store %arg21[%c1_110, %c0_111, %c0_112], %181 {strides = array<i32>} : memref<4x8x8xf32, #tpu.memory_space<vmem>>, vector<1x8x8xf32>,
      %182 = vector.extract_strided_slice %160 {offsets = [0, 16], sizes = [8, 8], strides = [1, 1]} : vector<8x32xf32> to vector<8x8xf32>
      %c2_113 = arith.constant 2 : index
      %c0_114 = arith.constant 0 : index
      %c0_115 = arith.constant 0 : index
      %183 = vector.load %arg20[%c2_113, %c0_114, %c0_115] : memref<4x8x8xf32, #tpu.memory_space<vmem>>, vector<1x8x8xf32>
      %184 = vector.shape_cast %183 : vector<1x8x8xf32> to vector<8x8xf32>
      %185 = vector.shape_cast %182 : vector<8x8xf32> to vector<1x8x8xf32>
      tpu.vector_store %arg20[%c2_113, %c0_114, %c0_115], %185 {strides = array<i32>} : memref<4x8x8xf32, #tpu.memory_space<vmem>>, vector<1x8x8xf32>,
      %186 = vector.extract_strided_slice %165 {offsets = [0, 16], sizes = [8, 8], strides = [1, 1]} : vector<8x32xf32> to vector<8x8xf32>
      %c2_116 = arith.constant 2 : index
      %c0_117 = arith.constant 0 : index
      %c0_118 = arith.constant 0 : index
      %187 = vector.load %arg21[%c2_116, %c0_117, %c0_118] : memref<4x8x8xf32, #tpu.memory_space<vmem>>, vector<1x8x8xf32>
      %188 = vector.shape_cast %187 : vector<1x8x8xf32> to vector<8x8xf32>
      %189 = vector.shape_cast %186 : vector<8x8xf32> to vector<1x8x8xf32>
      tpu.vector_store %arg21[%c2_116, %c0_117, %c0_118], %189 {strides = array<i32>} : memref<4x8x8xf32, #tpu.memory_space<vmem>>, vector<1x8x8xf32>,
      %190 = vector.extract_strided_slice %160 {offsets = [0, 24], sizes = [8, 8], strides = [1, 1]} : vector<8x32xf32> to vector<8x8xf32>
      %c3_119 = arith.constant 3 : index
      %c0_120 = arith.constant 0 : index
      %c0_121 = arith.constant 0 : index
      %191 = vector.load %arg20[%c3_119, %c0_120, %c0_121] : memref<4x8x8xf32, #tpu.memory_space<vmem>>, vector<1x8x8xf32>
      %192 = vector.shape_cast %191 : vector<1x8x8xf32> to vector<8x8xf32>
      %193 = vector.shape_cast %190 : vector<8x8xf32> to vector<1x8x8xf32>
      tpu.vector_store %arg20[%c3_119, %c0_120, %c0_121], %193 {strides = array<i32>} : memref<4x8x8xf32, #tpu.memory_space<vmem>>, vector<1x8x8xf32>,
      %194 = vector.extract_strided_slice %165 {offsets = [0, 24], sizes = [8, 8], strides = [1, 1]} : vector<8x32xf32> to vector<8x8xf32>
      %c3_122 = arith.constant 3 : index
      %c0_123 = arith.constant 0 : index
      %c0_124 = arith.constant 0 : index
      %195 = vector.load %arg21[%c3_122, %c0_123, %c0_124] : memref<4x8x8xf32, #tpu.memory_space<vmem>>, vector<1x8x8xf32>
      %196 = vector.shape_cast %195 : vector<1x8x8xf32> to vector<8x8xf32>
      %197 = vector.shape_cast %194 : vector<8x8xf32> to vector<1x8x8xf32>
      tpu.vector_store %arg21[%c3_122, %c0_123, %c0_124], %197 {strides = array<i32>} : memref<4x8x8xf32, #tpu.memory_space<vmem>>, vector<1x8x8xf32>,
    } else {
    }
    %c8_i32 = arith.constant 8 : i32
    %3 = arith.muli %arg1, %c8_i32 : i32
    %4 = tpu.assume_multiple %3, 8 : i32
    %c0 = arith.constant 0 : index
    %5 = arith.index_cast %4 : i32 to index
    %c0_1 = arith.constant 0 : index
    %6 = vector.load %arg2[%c0, %5, %c0_1] : memref<1x8x32xf32, #tpu.memory_space<vmem>>, vector<1x8x32xf32>
    %7 = vector.shape_cast %6 : vector<1x8x32xf32> to vector<8x32xf32>
    %c0_2 = arith.constant 0 : index
    %c0_3 = arith.constant 0 : index
    %8 = vector.load %arg3[%c0_2, %c0_3] : memref<32x32xf32, #tpu.memory_space<vmem>>, vector<32x32xf32>
    %cst = arith.constant dense<0.000000e+00> : vector<8x32xf32>
    %9 = tpu.matmul %7, %8, %cst {dimension_numbers = #tpu.dot_dimension_numbers<[1], [0], [0], [1], [0, 0, 1, 1], [], []>} : vector<8x32xf32>, vector<32x32xf32>, vector<8x32xf32> -> vector<8x32xf32>
    %c0_4 = arith.constant 0 : index
    %c0_5 = arith.constant 0 : index
    %10 = vector.load %arg6[%c0_4, %c0_5] : memref<1x32xf32, #tpu.memory_space<vmem>>, vector<1x32xf32>
    %11 = vector.broadcast %10 : vector<1x32xf32> to vector<8x32xf32>
    %12 = arith.addf %9, %11 : vector<8x32xf32>
    %cst_6 = arith.constant 0.353553385 : f32
    %13 = vector.broadcast %cst_6 : f32 to vector<8x32xf32>
    %14 = arith.mulf %12, %13 : vector<8x32xf32>
    %15 = vector.extract_strided_slice %14 {offsets = [0, 0], sizes = [8, 8], strides = [1, 1]} : vector<8x32xf32> to vector<8x8xf32>
    %c0_7 = arith.constant 0 : index
    %c0_8 = arith.constant 0 : index
    %c0_9 = arith.constant 0 : index
    %16 = vector.load %arg20[%c0_7, %c0_8, %c0_9] : memref<4x8x8xf32, #tpu.memory_space<vmem>>, vector<1x8x8xf32>
    %17 = vector.shape_cast %16 : vector<1x8x8xf32> to vector<8x8xf32>
    %cst_10 = arith.constant dense<0.000000e+00> : vector<8x8xf32>
    %18 = tpu.matmul %15, %17, %cst_10 {dimension_numbers = #tpu.dot_dimension_numbers<[1], [1], [0], [0], [0, 0, 1, 0], [], []>} : vector<8x8xf32>, vector<8x8xf32>, vector<8x8xf32> -> vector<8x8xf32>
    %cst_11 = arith.constant dense<0xFF800000> : vector<8xf32>
    %19 = vector.multi_reduction <maximumf>, %18, %cst_11 [1] : vector<8x8xf32> to vector<8xf32>
    %20 = vector.shape_cast %19 : vector<8xf32> to vector<8x1xf32>
    %21 = vector.broadcast %20 : vector<8x1xf32> to vector<8x8xf32>
    %22 = arith.subf %18, %21 : vector<8x8xf32>
    %23 = math.exp %22 : vector<8x8xf32>
    %cst_12 = arith.constant dense<0.000000e+00> : vector<8xf32>
    %24 = vector.multi_reduction <add>, %23, %cst_12 [1] : vector<8x8xf32> to vector<8xf32>
    %25 = vector.shape_cast %24 : vector<8xf32> to vector<8x1xf32>
    %c0_13 = arith.constant 0 : index
    %c0_14 = arith.constant 0 : index
    %c0_15 = arith.constant 0 : index
    %26 = vector.load %arg21[%c0_13, %c0_14, %c0_15] : memref<4x8x8xf32, #tpu.memory_space<vmem>>, vector<1x8x8xf32>
    %27 = vector.shape_cast %26 : vector<1x8x8xf32> to vector<8x8xf32>
    %cst_16 = arith.constant dense<0.000000e+00> : vector<8x8xf32>
    %28 = tpu.matmul %23, %27, %cst_16 {dimension_numbers = #tpu.dot_dimension_numbers<[1], [0], [0], [1], [0, 0, 1, 1], [], []>} : vector<8x8xf32>, vector<8x8xf32>, vector<8x8xf32> -> vector<8x8xf32>
    %29 = vector.broadcast %25 : vector<8x1xf32> to vector<8x8xf32>
    %30 = arith.divf %28, %29 : vector<8x8xf32>
    %c0_17 = arith.constant 0 : index
    %c0_18 = arith.constant 0 : index
    %31 = vector.load %arg22[%c0_17, %c0_18] : memref<8x32xf32, #tpu.memory_space<vmem>>, vector<8x8xf32>
    tpu.vector_store %arg22[%c0_17, %c0_18], %30 {strides = array<i32>} : memref<8x32xf32, #tpu.memory_space<vmem>>, vector<8x8xf32>,
    %32 = vector.extract_strided_slice %14 {offsets = [0, 8], sizes = [8, 8], strides = [1, 1]} : vector<8x32xf32> to vector<8x8xf32>
    %c1 = arith.constant 1 : index
    %c0_19 = arith.constant 0 : index
    %c0_20 = arith.constant 0 : index
    %33 = vector.load %arg20[%c1, %c0_19, %c0_20] : memref<4x8x8xf32, #tpu.memory_space<vmem>>, vector<1x8x8xf32>
    %34 = vector.shape_cast %33 : vector<1x8x8xf32> to vector<8x8xf32>
    %cst_21 = arith.constant dense<0.000000e+00> : vector<8x8xf32>
    %35 = tpu.matmul %32, %34, %cst_21 {dimension_numbers = #tpu.dot_dimension_numbers<[1], [1], [0], [0], [0, 0, 1, 0], [], []>} : vector<8x8xf32>, vector<8x8xf32>, vector<8x8xf32> -> vector<8x8xf32>
    %cst_22 = arith.constant dense<0xFF800000> : vector<8xf32>
    %36 = vector.multi_reduction <maximumf>, %35, %cst_22 [1] : vector<8x8xf32> to vector<8xf32>
    %37 = vector.shape_cast %36 : vector<8xf32> to vector<8x1xf32>
    %38 = vector.broadcast %37 : vector<8x1xf32> to vector<8x8xf32>
    %39 = arith.subf %35, %38 : vector<8x8xf32>
    %40 = math.exp %39 : vector<8x8xf32>
    %cst_23 = arith.constant dense<0.000000e+00> : vector<8xf32>
    %41 = vector.multi_reduction <add>, %40, %cst_23 [1] : vector<8x8xf32> to vector<8xf32>
    %42 = vector.shape_cast %41 : vector<8xf32> to vector<8x1xf32>
    %c1_24 = arith.constant 1 : index
    %c0_25 = arith.constant 0 : index
    %c0_26 = arith.constant 0 : index
    %43 = vector.load %arg21[%c1_24, %c0_25, %c0_26] : memref<4x8x8xf32, #tpu.memory_space<vmem>>, vector<1x8x8xf32>
    %44 = vector.shape_cast %43 : vector<1x8x8xf32> to vector<8x8xf32>
    %cst_27 = arith.constant dense<0.000000e+00> : vector<8x8xf32>
    %45 = tpu.matmul %40, %44, %cst_27 {dimension_numbers = #tpu.dot_dimension_numbers<[1], [0], [0], [1], [0, 0, 1, 1], [], []>} : vector<8x8xf32>, vector<8x8xf32>, vector<8x8xf32> -> vector<8x8xf32>
    %46 = vector.broadcast %42 : vector<8x1xf32> to vector<8x8xf32>
    %47 = arith.divf %45, %46 : vector<8x8xf32>
    %c0_28 = arith.constant 0 : index
    %c8 = arith.constant 8 : index
    %48 = vector.load %arg22[%c0_28, %c8] : memref<8x32xf32, #tpu.memory_space<vmem>>, vector<8x8xf32>
    tpu.vector_store %arg22[%c0_28, %c8], %47 {strides = array<i32>} : memref<8x32xf32, #tpu.memory_space<vmem>>, vector<8x8xf32>,
    %49 = vector.extract_strided_slice %14 {offsets = [0, 16], sizes = [8, 8], strides = [1, 1]} : vector<8x32xf32> to vector<8x8xf32>
    %c2 = arith.constant 2 : index
    %c0_29 = arith.constant 0 : index
    %c0_30 = arith.constant 0 : index
    %50 = vector.load %arg20[%c2, %c0_29, %c0_30] : memref<4x8x8xf32, #tpu.memory_space<vmem>>, vector<1x8x8xf32>
    %51 = vector.shape_cast %50 : vector<1x8x8xf32> to vector<8x8xf32>
    %cst_31 = arith.constant dense<0.000000e+00> : vector<8x8xf32>
    %52 = tpu.matmul %49, %51, %cst_31 {dimension_numbers = #tpu.dot_dimension_numbers<[1], [1], [0], [0], [0, 0, 1, 0], [], []>} : vector<8x8xf32>, vector<8x8xf32>, vector<8x8xf32> -> vector<8x8xf32>
    %cst_32 = arith.constant dense<0xFF800000> : vector<8xf32>
    %53 = vector.multi_reduction <maximumf>, %52, %cst_32 [1] : vector<8x8xf32> to vector<8xf32>
    %54 = vector.shape_cast %53 : vector<8xf32> to vector<8x1xf32>
    %55 = vector.broadcast %54 : vector<8x1xf32> to vector<8x8xf32>
    %56 = arith.subf %52, %55 : vector<8x8xf32>
    %57 = math.exp %56 : vector<8x8xf32>
    %cst_33 = arith.constant dense<0.000000e+00> : vector<8xf32>
    %58 = vector.multi_reduction <add>, %57, %cst_33 [1] : vector<8x8xf32> to vector<8xf32>
    %59 = vector.shape_cast %58 : vector<8xf32> to vector<8x1xf32>
    %c2_34 = arith.constant 2 : index
    %c0_35 = arith.constant 0 : index
    %c0_36 = arith.constant 0 : index
    %60 = vector.load %arg21[%c2_34, %c0_35, %c0_36] : memref<4x8x8xf32, #tpu.memory_space<vmem>>, vector<1x8x8xf32>
    %61 = vector.shape_cast %60 : vector<1x8x8xf32> to vector<8x8xf32>
    %cst_37 = arith.constant dense<0.000000e+00> : vector<8x8xf32>
    %62 = tpu.matmul %57, %61, %cst_37 {dimension_numbers = #tpu.dot_dimension_numbers<[1], [0], [0], [1], [0, 0, 1, 1], [], []>} : vector<8x8xf32>, vector<8x8xf32>, vector<8x8xf32> -> vector<8x8xf32>
    %63 = vector.broadcast %59 : vector<8x1xf32> to vector<8x8xf32>
    %64 = arith.divf %62, %63 : vector<8x8xf32>
    %c0_38 = arith.constant 0 : index
    %c16 = arith.constant 16 : index
    %65 = vector.load %arg22[%c0_38, %c16] : memref<8x32xf32, #tpu.memory_space<vmem>>, vector<8x8xf32>
    tpu.vector_store %arg22[%c0_38, %c16], %64 {strides = array<i32>} : memref<8x32xf32, #tpu.memory_space<vmem>>, vector<8x8xf32>,
    %66 = vector.extract_strided_slice %14 {offsets = [0, 24], sizes = [8, 8], strides = [1, 1]} : vector<8x32xf32> to vector<8x8xf32>
    %c3 = arith.constant 3 : index
    %c0_39 = arith.constant 0 : index
    %c0_40 = arith.constant 0 : index
    %67 = vector.load %arg20[%c3, %c0_39, %c0_40] : memref<4x8x8xf32, #tpu.memory_space<vmem>>, vector<1x8x8xf32>
    %68 = vector.shape_cast %67 : vector<1x8x8xf32> to vector<8x8xf32>
    %cst_41 = arith.constant dense<0.000000e+00> : vector<8x8xf32>
    %69 = tpu.matmul %66, %68, %cst_41 {dimension_numbers = #tpu.dot_dimension_numbers<[1], [1], [0], [0], [0, 0, 1, 0], [], []>} : vector<8x8xf32>, vector<8x8xf32>, vector<8x8xf32> -> vector<8x8xf32>
    %cst_42 = arith.constant dense<0xFF800000> : vector<8xf32>
    %70 = vector.multi_reduction <maximumf>, %69, %cst_42 [1] : vector<8x8xf32> to vector<8xf32>
    %71 = vector.shape_cast %70 : vector<8xf32> to vector<8x1xf32>
    %72 = vector.broadcast %71 : vector<8x1xf32> to vector<8x8xf32>
    %73 = arith.subf %69, %72 : vector<8x8xf32>
    %74 = math.exp %73 : vector<8x8xf32>
    %cst_43 = arith.constant dense<0.000000e+00> : vector<8xf32>
    %75 = vector.multi_reduction <add>, %74, %cst_43 [1] : vector<8x8xf32> to vector<8xf32>
    %76 = vector.shape_cast %75 : vector<8xf32> to vector<8x1xf32>
    %c3_44 = arith.constant 3 : index
    %c0_45 = arith.constant 0 : index
    %c0_46 = arith.constant 0 : index
    %77 = vector.load %arg21[%c3_44, %c0_45, %c0_46] : memref<4x8x8xf32, #tpu.memory_space<vmem>>, vector<1x8x8xf32>
    %78 = vector.shape_cast %77 : vector<1x8x8xf32> to vector<8x8xf32>
    %cst_47 = arith.constant dense<0.000000e+00> : vector<8x8xf32>
    %79 = tpu.matmul %74, %78, %cst_47 {dimension_numbers = #tpu.dot_dimension_numbers<[1], [0], [0], [1], [0, 0, 1, 1], [], []>} : vector<8x8xf32>, vector<8x8xf32>, vector<8x8xf32> -> vector<8x8xf32>
    %80 = vector.broadcast %76 : vector<8x1xf32> to vector<8x8xf32>
    %81 = arith.divf %79, %80 : vector<8x8xf32>
    %c0_48 = arith.constant 0 : index
    %c24 = arith.constant 24 : index
    %82 = vector.load %arg22[%c0_48, %c24] : memref<8x32xf32, #tpu.memory_space<vmem>>, vector<8x8xf32>
    tpu.vector_store %arg22[%c0_48, %c24], %81 {strides = array<i32>} : memref<8x32xf32, #tpu.memory_space<vmem>>, vector<8x8xf32>,
    %c0_49 = arith.constant 0 : index
    %c0_50 = arith.constant 0 : index
    %83 = vector.load %arg22[%c0_49, %c0_50] : memref<8x32xf32, #tpu.memory_space<vmem>>, vector<8x32xf32>
    %c0_51 = arith.constant 0 : index
    %c0_52 = arith.constant 0 : index
    %84 = vector.load %arg9[%c0_51, %c0_52] : memref<32x32xf32, #tpu.memory_space<vmem>>, vector<32x32xf32>
    %cst_53 = arith.constant dense<0.000000e+00> : vector<8x32xf32>
    %85 = tpu.matmul %83, %84, %cst_53 {dimension_numbers = #tpu.dot_dimension_numbers<[1], [0], [0], [1], [0, 0, 1, 1], [], []>} : vector<8x32xf32>, vector<32x32xf32>, vector<8x32xf32> -> vector<8x32xf32>
    %c0_54 = arith.constant 0 : index
    %c0_55 = arith.constant 0 : index
    %86 = vector.load %arg10[%c0_54, %c0_55] : memref<1x32xf32, #tpu.memory_space<vmem>>, vector<1x32xf32>
    %87 = vector.broadcast %86 : vector<1x32xf32> to vector<8x32xf32>
    %88 = arith.addf %85, %87 : vector<8x32xf32>
    %89 = arith.addf %7, %88 : vector<8x32xf32>
    %c0_56 = arith.constant 0 : index
    %c0_57 = arith.constant 0 : index
    %90 = vector.load %arg11[%c0_56, %c0_57] : memref<1x32xf32, #tpu.memory_space<vmem>>, vector<1x32xf32>
    %c0_58 = arith.constant 0 : index
    %c0_59 = arith.constant 0 : index
    %91 = vector.load %arg12[%c0_58, %c0_59] : memref<1x32xf32, #tpu.memory_space<vmem>>, vector<1x32xf32>
    %cst_60 = arith.constant dense<0.000000e+00> : vector<8xf32>
    %92 = vector.multi_reduction <add>, %89, %cst_60 [1] : vector<8x32xf32> to vector<8xf32>
    %93 = vector.shape_cast %92 : vector<8xf32> to vector<8x1xf32>
    %cst_61 = arith.constant 3.200000e+01 : f32
    %94 = vector.broadcast %cst_61 : f32 to vector<8x1xf32>
    %95 = arith.divf %93, %94 : vector<8x1xf32>
    %96 = vector.broadcast %95 : vector<8x1xf32> to vector<8x32xf32>
    %97 = arith.subf %89, %96 : vector<8x32xf32>
    %98 = arith.mulf %97, %97 : vector<8x32xf32>
    %cst_62 = arith.constant dense<0.000000e+00> : vector<8xf32>
    %99 = vector.multi_reduction <add>, %98, %cst_62 [1] : vector<8x32xf32> to vector<8xf32>
    %100 = vector.shape_cast %99 : vector<8xf32> to vector<8x1xf32>
    %cst_63 = arith.constant 3.200000e+01 : f32
    %101 = vector.broadcast %cst_63 : f32 to vector<8x1xf32>
    %102 = arith.divf %100, %101 : vector<8x1xf32>
    %103 = vector.broadcast %95 : vector<8x1xf32> to vector<8x32xf32>
    %104 = arith.subf %89, %103 : vector<8x32xf32>
    %105 = math.sqrt %102 : vector<8x1xf32>
    %cst_64 = arith.constant 1.000000e-10 : f32
    %106 = vector.broadcast %cst_64 : f32 to vector<8x1xf32>
    %107 = arith.addf %105, %106 : vector<8x1xf32>
    %108 = vector.broadcast %107 : vector<8x1xf32> to vector<8x32xf32>
    %109 = arith.divf %104, %108 : vector<8x32xf32>
    %110 = vector.broadcast %90 : vector<1x32xf32> to vector<8x32xf32>
    %111 = arith.mulf %109, %110 : vector<8x32xf32>
    %112 = vector.broadcast %91 : vector<1x32xf32> to vector<8x32xf32>
    %113 = arith.addf %111, %112 : vector<8x32xf32>
    %c0_65 = arith.constant 0 : index
    %c0_66 = arith.constant 0 : index
    %114 = vector.load %arg13[%c0_65, %c0_66] : memref<32x64xf32, #tpu.memory_space<vmem>>, vector<32x64xf32>
    %cst_67 = arith.constant dense<0.000000e+00> : vector<8x64xf32>
    %115 = tpu.matmul %113, %114, %cst_67 {dimension_numbers = #tpu.dot_dimension_numbers<[1], [0], [0], [1], [0, 0, 1, 1], [], []>} : vector<8x32xf32>, vector<32x64xf32>, vector<8x64xf32> -> vector<8x64xf32>
    %c0_68 = arith.constant 0 : index
    %c0_69 = arith.constant 0 : index
    %116 = vector.load %arg14[%c0_68, %c0_69] : memref<1x64xf32, #tpu.memory_space<vmem>>, vector<1x64xf32>
    %117 = vector.broadcast %116 : vector<1x64xf32> to vector<8x64xf32>
    %118 = arith.addf %115, %117 : vector<8x64xf32>
    %cst_70 = arith.constant 0.000000e+00 : f32
    %119 = vector.broadcast %cst_70 : f32 to vector<8x64xf32>
    %120 = arith.maximumf %118, %119 : vector<8x64xf32>
    %c0_71 = arith.constant 0 : index
    %c0_72 = arith.constant 0 : index
    %121 = vector.load %arg15[%c0_71, %c0_72] : memref<64x32xf32, #tpu.memory_space<vmem>>, vector<64x32xf32>
    %cst_73 = arith.constant dense<0.000000e+00> : vector<8x32xf32>
    %122 = tpu.matmul %120, %121, %cst_73 {dimension_numbers = #tpu.dot_dimension_numbers<[1], [0], [0], [1], [0, 0, 1, 1], [], []>} : vector<8x64xf32>, vector<64x32xf32>, vector<8x32xf32> -> vector<8x32xf32>
    %c0_74 = arith.constant 0 : index
    %c0_75 = arith.constant 0 : index
    %123 = vector.load %arg16[%c0_74, %c0_75] : memref<1x32xf32, #tpu.memory_space<vmem>>, vector<1x32xf32>
    %124 = vector.broadcast %123 : vector<1x32xf32> to vector<8x32xf32>
    %125 = arith.addf %122, %124 : vector<8x32xf32>
    %126 = arith.addf %113, %125 : vector<8x32xf32>
    %c0_76 = arith.constant 0 : index
    %c0_77 = arith.constant 0 : index
    %127 = vector.load %arg17[%c0_76, %c0_77] : memref<1x32xf32, #tpu.memory_space<vmem>>, vector<1x32xf32>
    %c0_78 = arith.constant 0 : index
    %c0_79 = arith.constant 0 : index
    %128 = vector.load %arg18[%c0_78, %c0_79] : memref<1x32xf32, #tpu.memory_space<vmem>>, vector<1x32xf32>
    %cst_80 = arith.constant dense<0.000000e+00> : vector<8xf32>
    %129 = vector.multi_reduction <add>, %126, %cst_80 [1] : vector<8x32xf32> to vector<8xf32>
    %130 = vector.shape_cast %129 : vector<8xf32> to vector<8x1xf32>
    %cst_81 = arith.constant 3.200000e+01 : f32
    %131 = vector.broadcast %cst_81 : f32 to vector<8x1xf32>
    %132 = arith.divf %130, %131 : vector<8x1xf32>
    %133 = vector.broadcast %132 : vector<8x1xf32> to vector<8x32xf32>
    %134 = arith.subf %126, %133 : vector<8x32xf32>
    %135 = arith.mulf %134, %134 : vector<8x32xf32>
    %cst_82 = arith.constant dense<0.000000e+00> : vector<8xf32>
    %136 = vector.multi_reduction <add>, %135, %cst_82 [1] : vector<8x32xf32> to vector<8xf32>
    %137 = vector.shape_cast %136 : vector<8xf32> to vector<8x1xf32>
    %cst_83 = arith.constant 3.200000e+01 : f32
    %138 = vector.broadcast %cst_83 : f32 to vector<8x1xf32>
    %139 = arith.divf %137, %138 : vector<8x1xf32>
    %140 = vector.broadcast %132 : vector<8x1xf32> to vector<8x32xf32>
    %141 = arith.subf %126, %140 : vector<8x32xf32>
    %142 = math.sqrt %139 : vector<8x1xf32>
    %cst_84 = arith.constant 1.000000e-10 : f32
    %143 = vector.broadcast %cst_84 : f32 to vector<8x1xf32>
    %144 = arith.addf %142, %143 : vector<8x1xf32>
    %145 = vector.broadcast %144 : vector<8x1xf32> to vector<8x32xf32>
    %146 = arith.divf %141, %145 : vector<8x32xf32>
    %147 = vector.broadcast %127 : vector<1x32xf32> to vector<8x32xf32>
    %148 = arith.mulf %146, %147 : vector<8x32xf32>
    %149 = vector.broadcast %128 : vector<1x32xf32> to vector<8x32xf32>
    %150 = arith.addf %148, %149 : vector<8x32xf32>
    %c0_85 = arith.constant 0 : index
    %c0_86 = arith.constant 0 : index
    %c0_87 = arith.constant 0 : index
    %151 = vector.load %arg19[%c0_85, %c0_86, %c0_87] : memref<1x8x32xf32, #tpu.memory_space<vmem>>, vector<1x8x32xf32>
    %152 = vector.shape_cast %151 : vector<1x8x32xf32> to vector<8x32xf32>
    %153 = vector.shape_cast %150 : vector<8x32xf32> to vector<1x8x32xf32>
    tpu.vector_store %arg19[%c0_85, %c0_86, %c0_87], %153 {strides = array<i32>} : memref<1x8x32xf32, #tpu.memory_space<vmem>>, vector<1x8x32xf32>,
    return
  }
  func.func @transform_0(%arg0: i32, %arg1: i32) -> (i32, i32, i32) {
    %c0_i32 = arith.constant 0 : i32
    %c0_i32_0 = arith.constant 0 : i32
    %c0_i32_1 = arith.constant 0 : i32
    return %arg0, %c0_i32, %c0_i32_0 : i32, i32, i32
  }
  func.func @transform_1(%arg0: i32, %arg1: i32) -> (i32, i32) {
    %c0_i32 = arith.constant 0 : i32
    %c0_i32_0 = arith.constant 0 : i32
    %c0_i32_1 = arith.constant 0 : i32
    return %c0_i32, %c0_i32_0 : i32, i32
  }
  func.func @transform_2(%arg0: i32, %arg1: i32) -> (i32, i32) {
    %c0_i32 = arith.constant 0 : i32
    %c0_i32_0 = arith.constant 0 : i32
    %c0_i32_1 = arith.constant 0 : i32
    return %c0_i32, %c0_i32_0 : i32, i32
  }
  func.func @transform_3(%arg0: i32, %arg1: i32) -> (i32, i32) {
    %c0_i32 = arith.constant 0 : i32
    %c0_i32_0 = arith.constant 0 : i32
    %c0_i32_1 = arith.constant 0 : i32
    return %c0_i32, %c0_i32_0 : i32, i32
  }
  func.func @transform_4(%arg0: i32, %arg1: i32) -> (i32, i32) {
    %c0_i32 = arith.constant 0 : i32
    %c0_i32_0 = arith.constant 0 : i32
    %c0_i32_1 = arith.constant 0 : i32
    return %c0_i32, %c0_i32_0 : i32, i32
  }
  func.func @transform_5(%arg0: i32, %arg1: i32) -> (i32, i32) {
    %c0_i32 = arith.constant 0 : i32
    %c0_i32_0 = arith.constant 0 : i32
    %c0_i32_1 = arith.constant 0 : i32
    return %c0_i32, %c0_i32_0 : i32, i32
  }
  func.func @transform_6(%arg0: i32, %arg1: i32) -> (i32, i32) {
    %c0_i32 = arith.constant 0 : i32
    %c0_i32_0 = arith.constant 0 : i32
    %c0_i32_1 = arith.constant 0 : i32
    return %c0_i32, %c0_i32_0 : i32, i32
  }
  func.func @transform_7(%arg0: i32, %arg1: i32) -> (i32, i32) {
    %c0_i32 = arith.constant 0 : i32
    %c0_i32_0 = arith.constant 0 : i32
    %c0_i32_1 = arith.constant 0 : i32
    return %c0_i32, %c0_i32_0 : i32, i32
  }
  func.func @transform_8(%arg0: i32, %arg1: i32) -> (i32, i32) {
    %c0_i32 = arith.constant 0 : i32
    %c0_i32_0 = arith.constant 0 : i32
    %c0_i32_1 = arith.constant 0 : i32
    return %c0_i32, %c0_i32_0 : i32, i32
  }
  func.func @transform_9(%arg0: i32, %arg1: i32) -> (i32, i32) {
    %c0_i32 = arith.constant 0 : i32
    %c0_i32_0 = arith.constant 0 : i32
    %c0_i32_1 = arith.constant 0 : i32
    return %c0_i32, %c0_i32_0 : i32, i32
  }
  func.func @transform_10(%arg0: i32, %arg1: i32) -> (i32, i32) {
    %c0_i32 = arith.constant 0 : i32
    %c0_i32_0 = arith.constant 0 : i32
    %c0_i32_1 = arith.constant 0 : i32
    return %c0_i32, %c0_i32_0 : i32, i32
  }
  func.func @transform_11(%arg0: i32, %arg1: i32) -> (i32, i32) {
    %c0_i32 = arith.constant 0 : i32
    %c0_i32_0 = arith.constant 0 : i32
    %c0_i32_1 = arith.constant 0 : i32
    return %c0_i32, %c0_i32_0 : i32, i32
  }
  func.func @transform_12(%arg0: i32, %arg1: i32) -> (i32, i32) {
    %c0_i32 = arith.constant 0 : i32
    %c0_i32_0 = arith.constant 0 : i32
    %c0_i32_1 = arith.constant 0 : i32
    return %c0_i32, %c0_i32_0 : i32, i32
  }
  func.func @transform_13(%arg0: i32, %arg1: i32) -> (i32, i32) {
    %c0_i32 = arith.constant 0 : i32
    %c0_i32_0 = arith.constant 0 : i32
    %c0_i32_1 = arith.constant 0 : i32
    return %c0_i32, %c0_i32_0 : i32, i32
  }
  func.func @transform_14(%arg0: i32, %arg1: i32) -> (i32, i32) {
    %c0_i32 = arith.constant 0 : i32
    %c0_i32_0 = arith.constant 0 : i32
    %c0_i32_1 = arith.constant 0 : i32
    return %c0_i32, %c0_i32_0 : i32, i32
  }
  func.func @transform_15(%arg0: i32, %arg1: i32) -> (i32, i32) {
    %c0_i32 = arith.constant 0 : i32
    %c0_i32_0 = arith.constant 0 : i32
    %c0_i32_1 = arith.constant 0 : i32
    return %c0_i32, %c0_i32_0 : i32, i32
  }
  func.func @transform_16(%arg0: i32, %arg1: i32) -> (i32, i32) {
    %c0_i32 = arith.constant 0 : i32
    %c0_i32_0 = arith.constant 0 : i32
    %c0_i32_1 = arith.constant 0 : i32
    return %c0_i32, %c0_i32_0 : i32, i32
  }
  func.func @transform_17(%arg0: i32, %arg1: i32) -> (i32, i32, i32) {
    %c0_i32 = arith.constant 0 : i32
    %c0_i32_0 = arith.constant 0 : i32
    return %arg0, %arg1, %c0_i32 : i32, i32, i32
  }
}

</mosaic_0001>

<bundles_post_ra>
// kernel: tpu_custom_call.1
= control target key start
LH: loop header
LB: loop body
LE: loop exit
PB: predicated region body
PF: predicated region fallthrough
CT: control target
= control target key end

     0   :  { %s3008_s0 = inlined_call_operand.hbm [shape: f32[2,8,32], index: 0, kind: input, shape index: {}]   ;;  %s3009_s1 = inlined_call_operand.vmem [shape: f32[32,32], index: 1, kind: input, shape index: {}]   ;;  %s3010_s2 = inlined_call_operand.vmem [shape: f32[32,32], index: 2, kind: input, shape index: {}]   ;;  %s3011_s3 = inlined_call_operand.vmem [shape: f32[32,32], index: 3, kind: input, shape index: {}]   ;;  %s3012_s4 = inlined_call_operand.vmem [shape: f32[1,32], index: 4, kind: input, shape index: {}]   ;;  %s3013_s5 = inlined_call_operand.vmem [shape: f32[1,32], index: 5, kind: input, shape index: {}]   ;;  %s3014_s6 = inlined_call_operand.vmem [shape: f32[1,32], index: 6, kind: input, shape index: {}]   ;;  %s3015_s7 = inlined_call_operand.hbm [shape: f32[32,32], index: 7, kind: input, shape index: {}]   ;;  %s3016_s8 = inlined_call_operand.vmem [shape: f32[1,32], index: 8, kind: input, shape index: {}]   ;;  %s3017_s9 = inlined_call_operand.vmem [shape: f32[1,32], index: 9, kind: input, shape index: {}]   ;;  %s3018_s10 = inlined_call_operand.vmem [shape: f32[1,32], index: 10, kind: input, shape index: {}]   ;;  %s3019_s11 = inlined_call_operand.hbm [shape: f32[32,64], index: 11, kind: input, shape index: {}]   ;;  %s3020_s12 = inlined_call_operand.vmem [shape: f32[1,64], index: 12, kind: input, shape index: {}]   ;;  %s3021_s13 = inlined_call_operand.vmem [shape: f32[64,32], index: 13, kind: input, shape index: {}]   ;;  %s3022_s14 = inlined_call_operand.vmem [shape: f32[1,32], index: 14, kind: input, shape index: {}]   ;;  %s3023_s15 = inlined_call_operand.vmem [shape: f32[1,32], index: 15, kind: input, shape index: {}]   ;;  %s3024_s16 = inlined_call_operand.vmem [shape: f32[1,32], index: 16, kind: input, shape index: {}]   ;;  %s3025_s17 = inlined_call_operand.hbm [shape: f32[2,8,32], index: 17, kind: output, shape index: {}]  }
   0x1   :  { %3035 = sst [smem:[#allocation20_spill]] %s3008_s0 }
   0x2   :  { %3036 = sst [smem:[#allocation21_spill]] %s3009_s1 }
   0x3   :  { %3037 = sst [smem:[#allocation22_spill]] %s3015_s7 }
   0x4   :  { %3038 = sst [smem:[#allocation23_spill]] %s3019_s11 }
   0x5   :  { %3039 = sst [smem:[#allocation24_spill]] %s3020_s12 }
   0x6   :  { %3040 = sst [smem:[#allocation25_spill]] %s3022_s14 }
   0x7   :  { %3041 = sst [smem:[#allocation26_spill]] %s3023_s15 }
   0x8   :  { %3042 = sst [smem:[#allocation27_spill]] %s3024_s16 }
   0x9   :  { %3043 = sst [smem:[#allocation28_spill]] %s3025_s17 }
   0xa   :  { %22 = vsyncpa [#allocation6], 0 }
   0xb   :  { %24 = vsyncpa [#allocation6 + $0x1], 0 }
   0xc   :  { %25 = vsyncpa [#allocation9], 0 }
   0xd   :  { %26 = vsyncpa [#allocation7], 0 }
   0xe   :  { %28 = vsyncpa [#allocation7 + $0x1], 0  ;;  %s2625_s24 = smov 0   ;;  %s2627_s25 = smov 0  }
   0xf   :  { %s2629_s26 = smov 0   ;;  %s2631_s27 = smov 0  }
  0x10   :  { %s2633_s28 = smov 0   ;;  %s2635_s29 = smov 0  }
  0x11 LB: > { %3044 = sst [smem:[#allocation15_spill]] %s2499_s24  ;;  %s2029_s0 = sadd.s32 4294967295, %s2519_s29   ;;  %s2519_s29 = sphi %s2635_s29, %s34_s29   ;;  %s2515_s28 = sphi %s2633_s28, %s3074_s28   ;;  %s2511_s27 = sphi %s2631_s27, %s3073_s27   ;;  %s2507_s26 = sphi %s2629_s26, %s3077_s26   ;;  %s2503_s25 = sphi %s2627_s25, %s3076_s25   ;;  %s2499_s24 = sphi %s2625_s24, %s3075_s24  }
  0x12   : > { %3045 = sst [smem:[#allocation16_spill]] %s2511_s27  ;;  %s2030_s30 = sadd.s32 4294967294, %s2519_s29  }
  0x13   : > { %3046 = sst [smem:[#allocation17_spill]] %s2515_s28  ;;  %p66_p0 = scmp.ne.s32.totalorder %s2503_s25, %s2499_s24 }
  0x14   : > { %p2659_p1 = scmp.eq.s32.totalorder %s2029_s0, 0  ;;  %p2663_p2 = scmp.eq.s32.totalorder %s2029_s0, 1 }
  0x15   : > { %p434_p3 = scmp.eq.s32.totalorder %s2030_s30, 1  ;;  %p2031_p5 = scmp.ge.s32.totalorder %s2519_s29, 1 }
  0x16   : > { %s3047_s18 = scalar_select %p2659_p1, 1, 0 }
  0x17   : > { %p2669_p4 = por %p2659_p1, %p66_p0  ;;  %p2674_p6 = por %p434_p3, %p66_p0 }
  0x18   : > { %p441_p7 = scmp.lt.s32.totalorder %s2519_s29, 3  ;;  %s2521_s22 = smov [#allocation8]  }
  0x19   : > { %s3049_s1 = scalar_select %p2669_p4, 1, 0 }
  0x1a   : > { %s3050_s20 = scalar_select %p2674_p6, 1, 0 }
  0x1b   : > { %p2679_p8 = pnand %p2031_p5, %p441_p7  ;;  %s471_s23 = sshll.u32 %s2521_s22, 4  ;;  %s472_s23 = int_to_ptr.vmem [resolvable:$true] %s471_s23 }
  0x1c   : > { %3051 = sst [smem:[#allocation18_spill]] %s3050_s20  ;;  %s2522_s30 = smov [#allocation10]  }
  0x1d   : > { %p2250_p9 = pneg %p2679_p8  ;;  %s493_s20 = sshll.u32 %s2522_s30, 4  ;;  %s494_s20 = int_to_ptr.vmem [resolvable:$true] %s493_s20 }
  0x1e   : > { %s2366_s24 = scalar_lea.vmem %s472_s23, 512  ;;  %p2374_p5 = scmp.lt.s32.totalorder %s472_s23, %s472_s23 }
  0x1f   : > { %p2688_p11 = pnand %p2250_p9, %p2659_p1  ;;  %p2367_p13 = scmp.ne.s32.totalorder %s472_s23, %s2366_s24 }
  0x20   : > { %p2375_p7 = scmp.lt.s32.totalorder %s2366_s24, %s2366_s24 }
  0x21   : > { %p2357_p12 = pneg %p2688_p11 }
  0x22   : > { %p2376_p10 = por %p2375_p7, %p2374_p5 }
  0x23   : > { %p2369_p0 = pnand %p2367_p13, %p2357_p12 }
  0x25   : > { %p2370_p3 = pneg %p2369_p0 }
  0x27   : > { %p2377_p9 = pnand %p2376_p10, %p2370_p3 }
  0x29   : > { %2380 = shalt.err (!%p2377_p9)
}
  0x2a   : > { %s2523_s22 = smov 128   ;;  %s2524_s17 = smov 8  }
  0x2b   : > { %s3054_s7 = sld [smem:[#allocation22_spill]]  ;;  %s2392_s15 = scalar_lea.vmem %s494_s20, 512 }
  0x2c   : > { %p2393_p6 = scmp.ne.s32.totalorder %s494_s20, %s2392_s15  ;;  %p2400_p1 = scmp.lt.s32.totalorder %s494_s20, %s494_s20 }
  0x2d   : > { %p2401_p4 = scmp.lt.s32.totalorder %s2392_s15, %s2392_s15 }
  0x2e   : > { %p2395_p13 = pnand %p2393_p6, %p2357_p12 }
  0x2f   : > { %p2402_p5 = por %p2401_p4, %p2400_p1 }
  0x30   : > { %p2396_p0 = pneg %p2395_p13 }
  0x31   : > { %2253 = dma.hbm_to_vmem [thread:$0]  (!%p2688_p11), %s3054_s7, 512, %s472_s23, [#allocation9], %s2523_s22, %s2523_s22, %s2524_s17  }
  0x32   : > { %p2403_p10 = pnand %p2402_p5, %p2396_p0 }
  0x34   : > { %2406 = shalt.err (!%p2403_p10)
}
  0x35   : > { %s3055_s11 = sld [smem:[#allocation23_spill]]  ;;  %s46_s15 = sadd.s32 1, %s2515_s28 }
  0x36   : > { %s53_s16 = sadd.s32 1, %s2507_s26  ;;  %p48_p1 = scmp.ge.s32.totalorder %s46_s15, 2 }
  0x37   : > { %p60_p4 = scmp.ne.s32.totalorder %s2507_s26, %s2503_s25  ;;  %p61_p6 = scmp.eq.s32.totalorder %s2519_s29, 0 }
  0x38   : > { %p2267_p12 = scmp.lt.s32.totalorder %s2519_s29, 2  ;;  %s3079_s15 = smov (%p48_p1, %s46_s15), 0 }
  0x39   : > { %3056 = sst [smem:[#allocation19_spill]] %s3079_s15  ;;  %p62_p3 = por %p61_p6, %p60_p4 }
  0x3a   : > { %p2720_p7 = por %p2663_p2, %p60_p4  ;;  %s50_s23 = ssub.s32 %s2515_s28, %s3079_s15 }
  0x3b   : > { %2256 = dma.hbm_to_vmem [thread:$0]  (!%p2688_p11), %s3055_s11, 512, %s494_s20, [#allocation9], %s2523_s22, %s2523_s22, %s2524_s17  }
  0x3c   : > { %s522_s0 = sand.u32 1, %s2507_s26   ;;  %p51_p9 = scmp.eq.s32.totalorder %s50_s23, 0 }
  0x3d   : > { %s2035_s17 = sshll.u32 %s522_s0, 3  ;;  %s2036_s20 = sshll.u32 %s2515_s28, 7 }
  0x3e   : > { %s2729_s22 = scalar_select %p51_p9, %s2507_s26, %s53_s16  }
  0x3f   : > { %s3058_s7 = sld [smem:[#allocation20_spill]]  ;;  %s526_s14 = scalar_lea.vmem [#allocation5], %s2035_s17 }
  0x40   : > { %s533_s12 = sshll.u32 %s526_s14, 4  ;;  %p2736_p11 = pnand %p2267_p12, %p62_p3  ;;  %s534_s12 = int_to_ptr.vmem [resolvable:$true] %s533_s12 }
  0x41   : > { %s523_s15 = scalar_lea.sflag [#allocation6], %s522_s0  ;;  %s2420_s23 = scalar_lea.vmem %s534_s12, 128 }
  0x42   : > { %p2409_p2 = pneg %p2736_p11  ;;  %p2421_p13 = scmp.ne.s32.totalorder %s534_s12, %s2420_s23 }
  0x43   : > { %s2525_s16 = smov [#allocation5]  }
  0x44   : > { %p2423_p0 = pnand %p2421_p13, %p2409_p2  ;;  %s2425_s28 = sshll.u32 %s2525_s16, 4  ;;  %s2426_s28 = int_to_ptr.vmem [resolvable:$false] %s2425_s28 }
  0x45   : > { %s531_s11 = scalar_lea.hbm %s3058_s7, %s2036_s20  ;;  %s2427_s7 = scalar_lea.vmem %s2426_s28, 256 }
  0x46   : > { %p2424_p5 = pneg %p2423_p0  ;;  %p2428_p10 = scmp.lt.s32.totalorder %s534_s12, %s2426_s28 }
  0x47   : > { %p2429_p1 = scmp.lt.s32.totalorder %s2427_s7, %s2420_s23 }
  0x49   : > { %p2430_p4 = por %p2429_p1, %p2428_p10 }
  0x4b   : > { %p2431_p6 = pnand %p2430_p4, %p2424_p5 }
  0x4d   : > { %2434 = shalt.err (!%p2431_p6)
}
  0x4e   : > { %2260 = dma.hbm_to_vmem [thread:$0]  (!%p2736_p11), %s531_s11, 128, %s534_s12, %s523_s15  }
  0x4f   : > { %542 = sbr.rel (%p2679_p8) target bundleno = 2351 (0x92f), region = 88  ;;  %s2747_s14 = sand.u32 (!%p2679_p8), 1, %s2503_s25  }
  0x50   : > { %s2038_s0 = sshll.u32 (!%p2679_p8), %s2747_s14, 3  ;;  %s545_s17 = scalar_lea.sflag (!%p2679_p8), [#allocation6], %s2747_s14 }
  0x51   : > { %s548_s28 = scalar_lea.vmem (!%p2679_p8), [#allocation5], %s2038_s0  ;;  %p3060_p12 = scmp.ne.s32.totalorder (!%p2679_p8), %s3049_s1, 0 }
  0x54   : > { %2486 = dma.done.wait (%p3060_p12), %s545_s17, 128  }
  0x55   : > { %2488 = vsyncadd (%p3060_p12), %s545_s17, 4294967168  ;;  %p3061_p3 = scmp.ne.s32.totalorder %s3047_s18, 0 }
  0x57   : > { %2490 = dma.done.wait (%p3061_p3), [#allocation9], 1024  }
  0x58   : > { %2492 = vsyncadd (%p3061_p3), [#allocation9], 4294966272  ;;  %v2526_v0 = vmov 0.0   ;;  %vm2527_vm0 = vmmov 0   ;;  %v615_v1 = vld [vmem:[%s3010_s2 + $0x18] sm:$0xff]  ;;  %v614_v2 = vld [vmem:[%s3010_s2 + $0x10] sm:$0xff] }
  0x59   : > { %2124 = vmatprep.subr.mxu1 %v2526_v0  ;;  %2146 = vmatprep.subr.mxu0 %v2526_v0  ;;  %s3062_s20 = sld [smem:[#allocation21_spill]]  ;;  %v613_v4 = vld [vmem:[%s3010_s2 + $0x8] sm:$0xff]  ;;  %v612_v7 = vld [vmem:[%s3010_s2] sm:$0xff]  ;;  %vm623_vm1 = vcmask 261120   ;;  %v700_v10 = vld [vmem:[%s3011_s3 + $0x18] sm:$0xff]  ;;  %vm778_vm2 = vcmask 64512  }
  0x5a   : > { %2132 = vmatprep.mubr.msk.f32.mxu1 %vm2527_vm0, %v2526_v0  ;;  %2154 = vmatprep.mubr.msk.f32.mxu0 %vm2527_vm0, %v2526_v0  ;;  %v2791_v8 = vld [vmem:[%s548_s28] sm:$0xff]  ;;  %v697_v13 = vld [vmem:[%s3011_s3] sm:$0xff]  ;;  %s2528_s12 = smov 104   ;;  %s2529_s1 = smov 120   ;;  %vm1235_vm3 = vcmask 130112   ;;  %vm1406_vm4 = vcmask 195712  }
  0x5b   : > { %2125 = vmatpush3.msra.mxu1 %v615_v1  ;;  %v699_v11 = vld [vmem:[%s3011_s3 + $0x10] sm:$0xff]  ;;  %v698_v12 = vld [vmem:[%s3011_s3 + $0x8] sm:$0xff]  ;;  %v2042_v14 = vld [vmem:[%s3013_s5] ss:$0 sm:$0xff]  ;;  %s2530_s28 = smov 112   ;;  %s2531_s15 = smov 8  }
  0x5c   : > { %2126 = vmatprep.subr.mxu1 %v2526_v0  ;;  %v2046_v15 = vld [vmem:[%s3012_s4] ss:$0 sm:$0xff]  ;;  %s2532_s30 = smov 16   ;;  %s2533_s24 = smov 24   ;;  %vm1577_vm5 = vcmask 261312   ;;  %vm1802_vm8 = vcmask 523264  }
  0x5d   : > { %2127 = vmatpush3.msra.mxu1 %v614_v2  ;;  %v2044_v24 = vld [vmem:[%s3014_s6] ss:$0 sm:$0xff]  ;;  %s3063_s18 = sld [smem:[#allocation24_spill]]  ;;  %s1915_s23 = scalar_lea.sflag [#allocation7], %s2747_s14 }
  0x5e   : > { %2128 = vmatprep.subr.mxu1 %v2526_v0  ;;  %s3065_s19 = sld [smem:[#allocation16_spill]] }
  0x5f   : > { %v819_v3 = vld [vmem:[%s3062_s20 + $0x18] sm:$0xff]  ;;  %v818_v5 = vld [vmem:[%s3062_s20 + $0x10] sm:$0xff]  ;;  %v817_v6 = vld [vmem:[%s3062_s20 + $0x8] sm:$0xff]  ;;  %2129 = vmatpush3.msra.mxu1 %v613_v4  ;;  %s3066_s7 = sld [smem:[#allocation26_spill]] }
  0x60   : > { %2147 = vmatpush3.msra.mxu0 %v819_v3  ;;  %v816_v9 = vld [vmem:[%s3062_s20] sm:$0xff]  ;;  %2130 = vmatprep.subr.mxu1 %v2526_v0 }
  0x61   : > { %2148 = vmatprep.subr.mxu0 %v2526_v0  ;;  %2131 = vmatpush3.msra.mxu1 %v612_v7 }
  0x62   : > { %2149 = vmatpush3.msra.mxu0 %v818_v5  ;;  %2133 = vmatmul.mubr.msk.f32.vlgmr.msra.gmra.mxu1 %vm623_vm1, %v2791_v8 }
  0x63   : > { %2150 = vmatprep.subr.mxu0 %v2526_v0  ;;  %2135 = vmatprep.subr.mxu1 %v2526_v0 }
  0x64   : > { %2151 = vmatpush3.msra.mxu0 %v817_v6  ;;  %2143 = vmatprep.mubr.msk.f32.mxu1 %vm2527_vm0, %v2526_v0 }
  0x65   : > { %2152 = vmatprep.subr.mxu0 %v2526_v0  ;;  %2136 = vmatpush3.msra.mxu1 %v700_v10 }
  0x66   : > { %2153 = vmatpush3.msra.mxu0 %v816_v9  ;;  %2137 = vmatprep.subr.mxu1 %v2526_v0 }
  0x67   : > { %2155 = vmatmul.mubr.msk.f32.vlgmr.msra.gmra.mxu0 %vm623_vm1, %v2791_v8  ;;  %2167 = vmatprep.subr.mxu0 %v2526_v0 }
  0x68   : > { %2169 = vmatprep.mubr.msk.f32.mxu0 %vm2527_vm0, %v2526_v0  ;;  %2138 = vmatpush3.msra.mxu1 %v699_v11 }
  0x69   : > { %2139 = vmatprep.subr.mxu1 %v2526_v0 }
  0x6a   : > { %2140 = vmatpush3.msra.mxu1 %v698_v12 }
  0x6b   : > { %2141 = vmatprep.subr.mxu1 %v2526_v0 }
  0x6c   : > { %2142 = vmatpush3.msra.mxu1 %v697_v13 }
  0x6d   : > { %2144 = vmatmul.mubr.msk.f32.vlgmr.msra.gmra.mxu1 %vm623_vm1, %v2791_v8  ;;  %2157 = vmatprep.subr.mxu1 %v2526_v0 }
  0x6e   : > { %2159 = vmatprep.mubr.msk.f32.mxu1 %vm2527_vm0, %v2526_v0 }
 0x122   : > { %v693_v16 = vpop.f32.mrf.mxu1 }
 0x123   : > { %v694_v17 = vadd.f32 %v2042_v14, %v693_v16 }
 0x124   : > { %v2134_v19 = vpop.f32.mrf.mxu1 }
 0x125   : > { %779 = vst.msk [vmem:[#allocation2] sm:$0xff] %vm778_vm2, %v694_v17  ;;  %803 = vrot.lane.b32.xlu1 %v694_v17, %s2528_s12  ;;  %782 = vrot.lane.b32.xlu0 %v694_v17, %s2529_s1 }
 0x127   : > { %v897_v18 = vpop.f32.mrf.mxu0 }
 0x128   : > { %v898_v20 = vadd.f32 %v2046_v15, %v897_v18 }
 0x129   : > { %v2156_v21 = vpop.f32.mrf.mxu0  ;;  %793 = vrot.lane.b32.xlu0 %v694_v17, %s2530_s28 }
 0x12a   : > { %v901_v22 = vmul.f32 0.35355338, %v898_v20 }
 0x12c   : > { %1068 = vrot.lane.b32.xlu1 %v901_v22, %s2529_s1  ;;  %v902_v23 = vld [vmem:[#allocation2] sm:$0xff] }
 0x12d   : > { %2158 = vmatpush3.xpose.msk.msra.mxu1 %vm778_vm2, %v902_v23  ;;  %1239 = vrot.lane.b32.xlu0 %v901_v22, %s2530_s28  ;;  %v774_v25 = vpop.f32.mrf.mxu1  ;;  %v1582_v23 = vld [vmem:[#allocation8 + $0x10] sm:$0xff] }
 0x12e   : > { %2162 = vmatprep.subr.mxu1 %v2526_v0  ;;  %v775_v26 = vadd.f32 %v2044_v24, %v774_v25 }
 0x12f   : > { %v2145_v27 = vpop.f32.mrf.mxu1 }
 0x130   : > { %1410 = vrot.lane.b32.xlu1 %v901_v22, %s2528_s12  ;;  %2160 = vmatmul.mubr.msk.f32.vlgmr.msra.gmra.mxu1 %vm778_vm2, %v901_v22  ;;  %780 = vst.msk [vmem:[#allocation3] sm:$0xff] %vm778_vm2, %v775_v26  ;;  %v1583_v22 = vld [vmem:[#allocation8 + $0x18] sm:$0xff] }
 0x131   : > { %2164 = vmatprep.mubr.msk.f32.mxu1 %vm2527_vm0, %v2526_v0 }
 0x134   : > { %788 = vrot.lane.b32.xlu1 %v775_v26, %s2529_s1  ;;  %s2071_s1 = sshll.u32 %s3065_s19, 7 }
 0x137   : > { %v989_v28 = vld [vmem:[#allocation3] sm:$0xff] }
 0x138   : > { %2163 = vmatpush3.msra.mxu1 %v989_v28 }
 0x139   : > { %2172 = vmatprep.subr.mxu1 %v2526_v0 }
 0x197   : > { %v804_v29 = vpop.permute.xlu1 %803  ;;  %v783_v30 = vpop.permute.xlu0 %782 }
 0x198   : > { %807 = vst.msk [vmem:[#allocation2 + $0x18] sm:$0xff] %vm778_vm2, %v804_v29  ;;  %786 = vst.msk [vmem:[#allocation2 + $0x8] sm:$0xff] %vm778_vm2, %v783_v30  ;;  %v1580_v29 = vld [vmem:[#allocation8] sm:$0xff] }
 0x19b   : > { %v794_v31 = vpop.permute.xlu0 %793 }
 0x19c   : > { %797 = vst.msk [vmem:[#allocation2 + $0x10] sm:$0xff] %vm778_vm2, %v794_v31 }
 0x19e   : > { %v1069_v33 = vpop.permute.xlu1 %1068 }
 0x19f   : > { %v1067_v32 = vld [vmem:[#allocation2 + $0x8] sm:$0xff]  ;;  %v1240_v35 = vpop.permute.xlu0 %1239  ;;  %v1409_v36 = vld [vmem:[#allocation2 + $0x18] sm:$0xff] }
 0x1a0   : > { %2168 = vmatpush3.xpose.msk.msra.mxu0 %vm778_vm2, %v1067_v32 }
 0x1a1   : > { %2177 = vmatprep.subr.mxu0 %v2526_v0 }
 0x1a2   : > { %v1411_v37 = vpop.permute.xlu1 %1410 }
 0x1a3   : > { %2170 = vmatmul.mubr.msk.f32.vlgmr.msra.gmra.mxu0 %vm778_vm2, %v1069_v33  ;;  %v1238_v34 = vld [vmem:[#allocation2 + $0x10] sm:$0xff] }
 0x1a4   : > { %2178 = vmatpush3.xpose.msk.msra.mxu0 %vm778_vm2, %v1238_v34  ;;  %2179 = vmatprep.mubr.msk.f32.mxu0 %vm2527_vm0, %v2526_v0 }
 0x1a5   : > { %2187 = vmatprep.subr.mxu0 %v2526_v0 }
 0x1a6   : > { %v789_v41 = vpop.permute.xlu1 %788 }
 0x1a7   : > { %2180 = vmatmul.mubr.msk.f32.vlgmr.msra.gmra.mxu0 %vm778_vm2, %v1240_v35  ;;  %792 = vst.msk [vmem:[#allocation3 + $0x8] sm:$0xff] %vm778_vm2, %v789_v41 }
 0x1a8   : > { %2188 = vmatpush3.xpose.msk.msra.mxu0 %vm778_vm2, %v1409_v36  ;;  %2189 = vmatprep.mubr.msk.f32.mxu0 %vm2527_vm0, %v2526_v0 }
 0x1a9   : > { %2197 = vmatprep.subr.mxu0 %v2526_v0 }
 0x1ab   : > { %2190 = vmatmul.mubr.msk.f32.vlgmr.msra.gmra.mxu0 %vm778_vm2, %v1411_v37 }
 0x1ac   : > { %2205 = vmatprep.mubr.msk.f32.mxu0 %vm2527_vm0, %v2526_v0  ;;  %2198 = vmatpush3.msra.mxu0 %v1583_v22 }
 0x1ad   : > { %2199 = vmatprep.subr.mxu0 %v2526_v0 }
 0x1ae   : > { %v1155_v54 = vld [vmem:[#allocation3 + $0x8] sm:$0xff]  ;;  %2200 = vmatpush3.msra.mxu0 %v1582_v23 }
 0x1af   : > { %2201 = vmatprep.subr.mxu0 %v2526_v0 }
 0x1f0   : > { %v976_v38 = vpop.f32.mrf.mxu1 }
 0x1f1   : > { %v980_v39 = vsel %vm778_vm2, %v976_v38, -inf }
 0x1f2   : > { %981 = vmax.xlane.f32.xlu0 %v980_v39  ;;  %v2161_v40 = vpop.f32.mrf.mxu1 }
 0x263   : > { %v1141_v42 = vpop.f32.mrf.mxu0 }
 0x264   : > { %v1145_v43 = vsel %vm778_vm2, %v1141_v42, -inf }
 0x265   : > { %v2171_v44 = vpop.f32.mrf.mxu0  ;;  %1146 = vmax.xlane.f32.xlu1 %v1145_v43 }
 0x267   : > { %v1312_v45 = vpop.f32.mrf.mxu0 }
 0x268   : > { %v1316_v46 = vsel %vm778_vm2, %v1312_v45, -inf }
 0x269   : > { %v2181_v47 = vpop.f32.mrf.mxu0  ;;  %1317 = vmax.xlane.f32.xlu0 %v1316_v46 }
 0x26b   : > { %v1483_v48 = vpop.f32.mrf.mxu0 }
 0x26c   : > { %v1487_v49 = vsel %vm778_vm2, %v1483_v48, -inf }
 0x26d   : > { %v2191_v50 = vpop.f32.mrf.mxu0  ;;  %1488 = vmax.xlane.f32.xlu0 %v1487_v49 }
 0x276   : > { %808 = vrot.lane.b32.xlu1 %v775_v26, %s2528_s12  ;;  %s3067_s12 = sld [smem:[#allocation27_spill]] }
 0x27b   : > { %v982_v51 = vpop.xlane.xlu0 %981 }
 0x27c   : > { %v983_v52 = vsub.f32 %v976_v38, %v982_v51 }
 0x27e   : > { %v984_v53 = vmul.f32 1.442695, %v983_v52 }
 0x280   : > { %2331 = vpow2.f32 %v984_v53  ;;  %v1705_v53 = vld [vmem:[#allocation10 + $0x18] sm:$0xff] }
 0x283   : > { %798 = vrot.lane.b32.xlu0 %v775_v26, %s2530_s28  ;;  %v1581_v26 = vld [vmem:[#allocation8 + $0x8] sm:$0xff]  ;;  %s606_s28 = scalar_lea.vmem [#allocation11], %s2038_s0 }
 0x284   : > { %2202 = vmatpush3.msra.mxu0 %v1581_v26  ;;  %s1929_s21 = sshll.u32 %s606_s28, 4  ;;  %s1930_s21 = int_to_ptr.vmem [resolvable:$true] %s1929_s21 }
 0x285   : > { %2203 = vmatprep.subr.mxu0 %v2526_v0  ;;  %s2435_s16 = scalar_lea.vmem %s1930_s21, 128 }
 0x286   : > { %2204 = vmatpush3.msra.mxu0 %v1580_v29  ;;  %p2436_p8 = scmp.ne.s32.totalorder %s1930_s21, %s2435_s16 }
 0x287   : > { %2219 = vmatprep.subr.mxu0 %v2526_v0 }
 0x288   : > { %p2437_p9 = pnand %p2436_p8, %p2720_p7 }
 0x28a   : > { %p2438_p11 = pneg %p2437_p9 }
 0x28d   : > { %v2332_v55 = vpop.eup %2331 }
 0x28e   : > { %2165 = vmatmul.mubr.msk.f32.vlgmr.msra.gmra.mxu1 %vm778_vm2, %v2332_v55  ;;  %v986_v10 = vsel %vm778_vm2, %v2332_v55, 0.0  ;;  %v1703_v55 = vld [vmem:[#allocation10 + $0x8] sm:$0xff] }
 0x28f   : > { %2173 = vmatpush3.msra.mxu1 %v1155_v54  ;;  %2174 = vmatprep.mubr.msk.f32.mxu1 %vm2527_vm0, %v2526_v0  ;;  %v1704_v54 = vld [vmem:[#allocation10 + $0x10] sm:$0xff] }
 0x290   : > { %2182 = vmatprep.subr.mxu1 %v2526_v0 }
 0x2ee   : > { %v1147_v56 = vpop.xlane.xlu1 %1146 }
 0x2ef   : > { %v1148_v57 = vsub.f32 %v1141_v42, %v1147_v56  ;;  %v2060_v42 = vld [vmem:[%s3016_s8] ss:$0 sm:$0xff]  ;;  %v1794_v56 = vld [vmem:[%s3021_s13 + $0x38] sm:$0xff] }
 0x2f1   : > { %v1149_v58 = vmul.f32 1.442695, %v1148_v57  ;;  %v1793_v57 = vld [vmem:[%s3021_s13 + $0x30] sm:$0xff] }
 0x2f2   : > { %v809_v59 = vpop.permute.xlu1 %808  ;;  %v1318_v60 = vpop.xlane.xlu0 %1317 }
 0x2f3   : > { %2333 = vpow2.f32 %v1149_v58  ;;  %812 = vst.msk [vmem:[#allocation3 + $0x18] sm:$0xff] %vm778_vm2, %v809_v59  ;;  %v1319_v61 = vsub.f32 %v1312_v45, %v1318_v60  ;;  %v1792_v58 = vld [vmem:[%s3021_s13 + $0x28] sm:$0xff]  ;;  %v1791_v59 = vld [vmem:[%s3021_s13 + $0x20] sm:$0xff]  ;;  %v1790_v60 = vld [vmem:[%s3021_s13 + $0x18] sm:$0xff] }
 0x2f5   : > { %v1320_v62 = vmul.f32 1.442695, %v1319_v61 }
 0x2f6   : > { %v1489_v63 = vpop.xlane.xlu0 %1488 }
 0x2f7   : > { %2335 = vpow2.f32 %v1320_v62  ;;  %v1490_v1 = vsub.f32 %v1483_v48, %v1489_v63 }
 0x2f9   : > { %v1491_v2 = vmul.f32 1.442695, %v1490_v1 }
 0x2fa   : > { %v799_v3 = vpop.permute.xlu0 %798  ;;  %v1497_v9 = vld [vmem:[#allocation3 + $0x18] sm:$0xff] }
 0x2fb   : > { %2337 = vpow2.f32 %v1491_v2  ;;  %802 = vst.msk [vmem:[#allocation3 + $0x10] sm:$0xff] %vm778_vm2, %v799_v3 }
 0x300   : > { %v2334_v4 = vpop.eup %2333 }
 0x301   : > { %2175 = vmatmul.mubr.msk.f32.vlgmr.msra.gmra.mxu1 %vm778_vm2, %v2334_v4  ;;  %v1151_v5 = vsel %vm778_vm2, %v2334_v4, 0.0 }
 0x302   : > { %1152 = vadd.xlane.f32.xlu1 %v1151_v5  ;;  %v1326_v6 = vld [vmem:[#allocation3 + $0x10] sm:$0xff]  ;;  %2184 = vmatprep.mubr.msk.f32.mxu1 %vm2527_vm0, %v2526_v0 }
 0x303   : > { %2183 = vmatpush3.msra.mxu1 %v1326_v6 }
 0x304   : > { %v2336_v7 = vpop.eup %2335  ;;  %2192 = vmatprep.subr.mxu1 %v2526_v0 }
 0x305   : > { %2185 = vmatmul.mubr.msk.f32.vlgmr.msra.gmra.mxu1 %vm778_vm2, %v2336_v7  ;;  %v1322_v11 = vsel %vm778_vm2, %v2336_v7, 0.0  ;;  %v2062_v7 = vld [vmem:[%s3017_s9] ss:$0 sm:$0xff] }
 0x306   : > { %2193 = vmatpush3.msra.mxu1 %v1497_v9  ;;  %987 = vadd.xlane.f32.xlu1 %v986_v10  ;;  %v2063_v10 = vld [vmem:[%s3018_s10] ss:$0 sm:$0xff] }
 0x307   : > { %1323 = vadd.xlane.f32.xlu0 %v1322_v11  ;;  %2194 = vmatprep.mubr.msk.f32.mxu1 %vm2527_vm0, %v2526_v0 }
 0x308   : > { %v2338_v12 = vpop.eup %2337  ;;  %2208 = vmatprep.subr.mxu1 %v2526_v0 }
 0x309   : > { %2195 = vmatmul.mubr.msk.f32.vlgmr.msra.gmra.mxu1 %vm778_vm2, %v2338_v12  ;;  %v1493_v13 = vsel %vm778_vm2, %v2338_v12, 0.0 }
 0x30a   : > { %2216 = vmatprep.mubr.msk.f32.mxu1 %vm2527_vm0, %v2526_v0  ;;  %2209 = vmatpush3.msra.mxu1 %v1705_v53 }
 0x30b   : > { %1494 = vadd.xlane.f32.xlu0 %v1493_v13  ;;  %2210 = vmatprep.subr.mxu1 %v2526_v0  ;;  %v1789_v13 = vld [vmem:[%s3021_s13 + $0x10] sm:$0xff] }
 0x30c   : > { %2211 = vmatpush3.msra.mxu1 %v1704_v54 }
 0x30d   : > { %2212 = vmatprep.subr.mxu1 %v2526_v0 }
 0x30e   : > { %2213 = vmatpush3.msra.mxu1 %v1703_v55 }
 0x30f   : > { %2214 = vmatprep.subr.mxu1 %v2526_v0 }
 0x34e   : > { %v1059_v14 = vpop.f32.mrf.mxu1 }
 0x350   : > { %v2166_v15 = vpop.f32.mrf.mxu1 }
 0x351   : > { %v1787_v15 = vld [vmem:[%s3021_s13] sm:$0xff] }
 0x38b   : > { %v1153_v16 = vpop.xlane.xlu1 %1152 }
 0x38f   : > { %v988_v17 = vpop.xlane.xlu1 %987 }
 0x390   : > { %2339 = vrcp.f32 %v988_v17  ;;  %v1324_v20 = vpop.xlane.xlu0 %1323 }
 0x391   : > { %2341 = vrcp.f32 %v1153_v16  ;;  %v2064_v16 = vld [vmem:[%s3063_s18] ss:$0 sm:$0xff] }
 0x392   : > { %2343 = vrcp.f32 %v1324_v20 }
 0x394   : > { %v1495_v21 = vpop.xlane.xlu0 %1494 }
 0x395   : > { %2345 = vrcp.f32 %v1495_v21 }
 0x39d   : > { %v2340_v18 = vpop.eup %2339 }
 0x39e   : > { %v1064_v19 = vmul.f32 %v2340_v18, %v1059_v14  ;;  %v2342_v24 = vpop.eup %2341  ;;  %v1788_v14 = vld [vmem:[%s3021_s13 + $0x8] sm:$0xff] }
 0x39f   : > { %v2344_v30 = vpop.eup %2343 }
 0x3a0   : > { %1065 = vst.msk [vmem:[#allocation4] sm:$0xff] %vm778_vm2, %v1064_v19 }
 0x3a2   : > { %v2346_v34 = vpop.eup %2345 }
 0x3c1   : > { %v1225_v25 = vpop.f32.mrf.mxu1 }
 0x3c2   : > { %v1230_v27 = vmul.f32 %v2342_v24, %v1225_v25 }
 0x3c3   : > { %v2176_v28 = vpop.f32.mrf.mxu1 }
 0x3c4   : > { %1232 = vrot.lane.b32.xlu0 %v1230_v27, %s2531_s15 }
 0x3c5   : > { %v1396_v31 = vpop.f32.mrf.mxu1 }
 0x3c6   : > { %v1401_v32 = vmul.f32 %v2344_v30, %v1396_v31 }
 0x3c7   : > { %v2186_v33 = vpop.f32.mrf.mxu1 }
 0x3c8   : > { %1403 = vrot.lane.b32.xlu1 %v1401_v32, %s2532_s30  ;;  %s3068_s30 = sld [smem:[#allocation28_spill]] }
 0x3c9   : > { %v1567_v35 = vpop.f32.mrf.mxu1 }
 0x3ca   : > { %v1572_v36 = vmul.f32 %v2346_v34, %v1567_v35 }
 0x3cb   : > { %v2196_v37 = vpop.f32.mrf.mxu1 }
 0x3cc   : > { %1574 = vrot.lane.b32.xlu1 %v1572_v36, %s2533_s24  ;;  %s3064_s24 = sld [smem:[#allocation25_spill]] }
 0x3d2   : > { %v2066_v21 = vld [vmem:[%s3064_s24] ss:$0 sm:$0xff]  ;;  %s1927_s24 = scalar_lea.hbm %s3068_s30, %s2071_s1 }
 0x436   : > { %v1233_v38 = vpop.permute.xlu0 %1232 }
 0x437   : > { %1236 = vst.msk [vmem:[#allocation4] sm:$0xff] %vm1235_vm3, %v1233_v38 }
 0x43a   : > { %v1404_v39 = vpop.permute.xlu1 %1403 }
 0x43b   : > { %1407 = vst.msk [vmem:[#allocation4] sm:$0xff] %vm1406_vm4, %v1404_v39 }
 0x43e   : > { %v1575_v40 = vpop.permute.xlu1 %1574 }
 0x43f   : > { %1578 = vst.msk [vmem:[#allocation4] sm:$0xff] %vm1577_vm5, %v1575_v40  ;;  %v2068_v40 = vld [vmem:[%s3066_s7] ss:$0 sm:$0xff]  ;;  %s2534_s7 = smov [#allocation11]  }
 0x440   : > { %s2439_s19 = sshll.u32 %s2534_s7, 4  ;;  %s2440_s19 = int_to_ptr.vmem [resolvable:$false] %s2439_s19 }
 0x441   : > { %s2441_s0 = scalar_lea.vmem %s2440_s19, 256  ;;  %p2442_p2 = scmp.lt.s32.totalorder %s1930_s21, %s2440_s19 }
 0x442   : > { %p2443_p13 = scmp.lt.s32.totalorder %s2441_s0, %s2435_s16 }
 0x444   : > { %p2444_p0 = por %p2443_p13, %p2442_p2 }
 0x446   : > { %v1579_v41 = vld [vmem:[#allocation4] sm:$0xff]  ;;  %p2445_p5 = pnand %p2444_p0, %p2438_p11 }
 0x447   : > { %2206 = vmatmul.mubr.msk.f32.vlgmr.msra.gmra.mxu0 %vm623_vm1, %v1579_v41 }
 0x448   : > { %2235 = vmatprep.mubr.msk.f32.mxu0 %vm2527_vm0, %v2526_v0  ;;  %2220 = vmatpush3.msra.mxu0 %v1794_v56 }
 0x449   : > { %2221 = vmatprep.subr.mxu0 %v2526_v0 }
 0x44a   : > { %2222 = vmatpush3.msra.mxu0 %v1793_v57 }
 0x44b   : > { %2223 = vmatprep.subr.mxu0 %v2526_v0 }
 0x44c   : > { %2224 = vmatpush3.msra.mxu0 %v1792_v58 }
 0x44d   : > { %2225 = vmatprep.subr.mxu0 %v2526_v0 }
 0x44e   : > { %2226 = vmatpush3.msra.mxu0 %v1791_v59 }
 0x44f   : > { %2227 = vmatprep.subr.mxu0 %v2526_v0 }
 0x450   : > { %2228 = vmatpush3.msra.mxu0 %v1790_v60 }
 0x451   : > { %2229 = vmatprep.subr.mxu0 %v2526_v0 }
 0x452   : > { %2230 = vmatpush3.msra.mxu0 %v1789_v13 }
 0x453   : > { %2231 = vmatprep.subr.mxu0 %v2526_v0 }
 0x454   : > { %2232 = vmatpush3.msra.mxu0 %v1788_v14 }
 0x455   : > { %2233 = vmatprep.subr.mxu0 %v2526_v0 }
 0x456   : > { %2234 = vmatpush3.msra.mxu0 %v1787_v15 }
 0x507   : > { %v1660_v43 = vpop.f32.mrf.mxu0 }
 0x508   : > { %v1661_v44 = vadd.f32 %v2060_v42, %v1660_v43  ;;  %v2069_v42 = vld [vmem:[%s3067_s12] ss:$0 sm:$0xff] }
 0x509   : > { %v2207_v45 = vpop.f32.mrf.mxu0 }
 0x50a   : > { %v1664_v46 = vadd.f32 %v1661_v44, %v2791_v8  ;;  %v1702_v8 = vld [vmem:[#allocation10] sm:$0xff] }
 0x50b   : > { %2215 = vmatpush3.msra.mxu1 %v1702_v8 }
 0x50c   : > { %v1667_v47 = vsel %vm623_vm1, %v1664_v46, 0.0 }
 0x50d   : > { %1668 = vadd.xlane.f32.xlu0 %v1667_v47 }
 0x596   : > { %v1669_v48 = vpop.xlane.xlu0 %1668 }
 0x597   : > { %v1671_v49 = vmul.f32 0.03125, %v1669_v48 }
 0x599   : > { %v1672_v50 = vsub.f32 %v1664_v46, %v1671_v49 }
 0x59b   : > { %v1673_v51 = vmul.f32 %v1672_v50, %v1672_v50 }
 0x59d   : > { %v1674_v52 = vsel %vm623_vm1, %v1673_v51, 0.0 }
 0x59e   : > { %1675 = vadd.xlane.f32.xlu1 %v1674_v52 }
 0x627   : > { %v1676_v61 = vpop.xlane.xlu1 %1675 }
 0x628   : > { %v1677_v62 = vmul.f32 0.03125, %v1676_v61 }
 0x62a   : > { %2347 = vrsqrt.f32 %v1677_v62  ;;  %vm1680_vm6 = vcmp.eq.f32.partialorder %v1677_v62, inf  ;;  %v1683_v2 = vand.u32 2147483648, %v1677_v62  ;;  %vm1682_vm7 = vcmp.eq.f32.partialorder %v1677_v62, 0.0 }
 0x637   : > { %v2348_v63 = vpop.eup %2347 }
 0x638   : > { %v1679_v1 = vmul.f32 %v2348_v63, %v1677_v62 }
 0x63a   : > { %v1681_v3 = vsel %vm1680_vm6, %v1677_v62, %v1679_v1 }
 0x63b   : > { %v1684_v4 = vsel %vm1682_vm7, %v1683_v2, %v1681_v3 }
 0x63c   : > { %v1685_v5 = vadd.f32 1e-10, %v1684_v4 }
 0x63e   : > { %2349 = vrcp.f32 %v1685_v5 }
 0x64b   : > { %v2350_v6 = vpop.eup %2349 }
 0x64c   : > { %v1687_v9 = vmul.f32 %v2350_v6, %v1672_v50 }
 0x64e   : > { %v1694_v11 = vmul.f32 %v2062_v7, %v1687_v9 }
 0x650   : > { %v1701_v12 = vadd.f32 %v2063_v10, %v1694_v11 }
 0x652   : > { %2217 = vmatmul.mubr.msk.f32.vlgmr.msra.gmra.mxu1 %vm623_vm1, %v1701_v12 }
 0x712   : > { %v1782_v17 = vpop.f32.mrf.mxu1 }
 0x713   : > { %v1783_v18 = vadd.f32 %v2064_v16, %v1782_v17 }
 0x714   : > { %v2218_v19 = vpop.f32.mrf.mxu1 }
 0x715   : > { %v1786_v20 = vmax.f32 %v1783_v18, 0.0 }
 0x717   : > { %2236 = vmatmul.mubr.msk.f32.vlgmr.msra.gmra.mxu0 %vm1802_vm8, %v1786_v20 }
 0x7d7   : > { %v1872_v22 = vpop.f32.mrf.mxu0 }
 0x7d8   : > { %v1873_v23 = vadd.f32 %v2066_v21, %v1872_v22 }
 0x7d9   : > { %v2237_v24 = vpop.f32.mrf.mxu0 }
 0x7da   : > { %v1876_v25 = vadd.f32 %v1873_v23, %v1701_v12 }
 0x7dc   : > { %v1879_v0 = vsel %vm623_vm1, %v1876_v25, 0.0 }
 0x7dd   : > { %1880 = vadd.xlane.f32.xlu0 %v1879_v0 }
 0x866   : > { %v1881_v26 = vpop.xlane.xlu0 %1880 }
 0x867   : > { %v1882_v27 = vmul.f32 0.03125, %v1881_v26 }
 0x869   : > { %v1883_v28 = vsub.f32 %v1876_v25, %v1882_v27 }
 0x86b   : > { %v1884_v29 = vmul.f32 %v1883_v28, %v1883_v28 }
 0x86d   : > { %v1885_v30 = vsel %vm623_vm1, %v1884_v29, 0.0 }
 0x86e   : > { %1886 = vadd.xlane.f32.xlu0 %v1885_v30 }
 0x8f7   : > { %v1887_v31 = vpop.xlane.xlu0 %1886 }
 0x8f8   : > { %v1888_v32 = vmul.f32 0.03125, %v1887_v31 }
 0x8fa   : > { %2351 = vrsqrt.f32 %v1888_v32  ;;  %vm1891_vm9 = vcmp.eq.f32.partialorder %v1888_v32, inf  ;;  %v1894_v35 = vand.u32 2147483648, %v1888_v32  ;;  %vm1893_vm10 = vcmp.eq.f32.partialorder %v1888_v32, 0.0 }
 0x907   : > { %v2352_v33 = vpop.eup %2351 }
 0x908   : > { %v1890_v34 = vmul.f32 %v2352_v33, %v1888_v32 }
 0x90a   : > { %v1892_v36 = vsel %vm1891_vm9, %v1888_v32, %v1890_v34 }
 0x90b   : > { %v1895_v37 = vsel %vm1893_vm10, %v1894_v35, %v1892_v36 }
 0x90c   : > { %v1896_v38 = vadd.f32 1e-10, %v1895_v37 }
 0x90e   : > { %2353 = vrcp.f32 %v1896_v38 }
 0x91b   : > { %v2354_v39 = vpop.eup %2353 }
 0x91c   : > { %v1898_v41 = vmul.f32 %v2354_v39, %v1883_v28 }
 0x91e   : > { %v1905_v43 = vmul.f32 %v2068_v40, %v1898_v41 }
 0x920   : > { %v1912_v44 = vadd.f32 %v2069_v42, %v1905_v43 }
 0x922   : > { %1913 = vst.msk [vmem:[%s606_s28] sm:$0xff] %vm623_vm1, %v1912_v44 }
 0x923   : > { %2448 = shalt.err (!%p2445_p5)
}
 0x924   : > { %s2449_s17 = scalar_lea.hbm %s1927_s24, 128  ;;  %s2453_s12 = scalar_lea.hbm %s3068_s30, 256 }
 0x925   : > { %p2450_p10 = scmp.ne.s32.totalorder %s1927_s24, %s2449_s17  ;;  %p2454_p6 = scmp.lt.s32.totalorder %s1927_s24, %s3068_s30 }
 0x926   : > { %p2455_p12 = scmp.lt.s32.totalorder %s2453_s12, %s2449_s17 }
 0x927   : > { %p2451_p1 = pnand %p2450_p10, %p2720_p7 }
 0x928   : > { %p2456_p3 = por %p2455_p12, %p2454_p6 }
 0x929   : > { %p2452_p4 = pneg %p2451_p1 }
 0x92b   : > { %p2457_p8 = pnand %p2456_p3, %p2452_p4 }
 0x92d   : > { %2460 = shalt.err (!%p2457_p8)
}
 0x92e   : > { %2248 = dma.vmem_to_hbm [thread:$0]  (%p2720_p7), %s1930_s21, 128, %s1927_s24, %s1915_s23  }
 0x92f PF: > { %s3069_s18 = sld [smem:[#allocation15_spill]]  ;;  %p3072_p11 = scmp.ge.s32.totalorder %s2519_s29, 2 }
 0x930   : > { %s3070_s15 = sld [smem:[#allocation18_spill]] }
 0x935   : > { %s1941_s16 = sand.u32 1, %s3069_s18  }
 0x936   : > { %p3071_p9 = scmp.ne.s32.totalorder %s3070_s15, 0  ;;  %s1942_s7 = scalar_lea.sflag [#allocation7], %s1941_s16 }
 0x938   : > { %p2262_p2 = pnand %p3072_p11, %p3071_p9 }
 0x93a   : > { %p2263_p13 = pneg %p2262_p2 }
 0x93c   : > { %2494 = dma.done.wait (%p2263_p13), %s1942_s7, 128  }
 0x93d   : > { %2496 = vsyncadd (%p2263_p13), %s1942_s7, 4294967168  ;;  %s34_s29 = sadd.s32 1, %s2519_s29   ;;  %s3073_s27 = sld [smem:[#allocation17_spill]] }
 0x93e   : > { %p31_p0 = scmp.ge.s32.totalorder %s34_s29, 4   ;;  %s3074_s28 = sld [smem:[#allocation19_spill]] }
 0x93f   : > { %s3075_s24 = smov %s2503_s25  ;;  %s3076_s25 = smov %s2507_s26 }
 0x940   : > { %s3077_s26 = smov %s2729_s22  ;;  %33 = sbr.rel (!%p31_p0) target bundleno = 17 (0x11), region = 158 }
 0x945   :  { %1947 = vsyncpa [#allocation6], 1 }
 0x946   :  { %1949 = vsyncpa [#allocation6 + $0x1], 1 }
 0x947   :  { %1950 = vsyncpa [#allocation9], 1 }
 0x948   :  { %1951 = vsyncpa [#allocation7], 1 }
 0x949   :  { %1953 = vsyncpa [#allocation7 + $0x1], 1 }

</bundles_post_ra>
